<compile_context>
chip_gen: v6e
topology: v6e:2x2x1
jax: 0.10.0
libtpu: 0.0.40
codegen_flags: <defaults>
</compile_context>

<pallas_src>
import functools
import math

import numpy as np
import jax
import jax.numpy as jnp
from jax.experimental import pallas as pl
from jax.experimental.pallas import tpu as pltpu


# ----------------------------------------------------------------------------
# helpers
# ----------------------------------------------------------------------------
def _vmem_spec():
    return pl.BlockSpec(memory_space=pltpu.MemorySpace.VMEM)


def _ln(x, g, b, eps):
    mu = jnp.mean(x, axis=-1, keepdims=True)
    var = jnp.mean(jnp.square(x - mu), axis=-1, keepdims=True)
    return (x - mu) * jax.lax.rsqrt(var + eps) * g + b


def conv_len(length, kernel, stride):
    # matches Orpheus3Classifier.get_conv_output_length (dilation=1, padding=0)
    return (length - (kernel - 1) - 1) // stride + 1


def sinusoidal_pe(max_len, d):
    pos = np.arange(max_len, dtype=np.float32)[:, None]
    div = np.power(10000.0, np.arange(0, d, 2, dtype=np.float32) / d)
    P = np.zeros((max_len, d), dtype=np.float32)
    P[:, 0::2] = np.sin(pos / div)
    P[:, 1::2] = np.cos(pos / div)
    return jnp.asarray(P)


def im2col_pooled_flat(x, kernel, conv_stride, pool):
    """Wrapper-side im2col for conv block 1 (tiny raw input only).

    Returns (xcat, Lp) with xcat of shape (2*B*Lp, kernel*C) bf16:
      rows [:B*Lp]  = im2col rows of conv position 2*j (even half of pool window)
      rows [B*Lp:]  = im2col rows of conv position 2*j+1 (odd half)
    so pooled position j = max(conv(row_even_j), conv(row_odd_j)).
    """
    B, L, C = x.shape
    Lc = (L - kernel) // conv_stride + 1
    Lp = (Lc - pool) // pool + 1
    step = conv_stride * pool

    def gather(off):
        cols = [x[:, off + k: off + k + step * (Lp - 1) + 1: step, :]
                for k in range(kernel)]
        return jnp.concatenate(cols, axis=-1).reshape(B * Lp, kernel * C)

    xcat = jnp.concatenate([gather(0), gather(conv_stride)], axis=0)
    return xcat.astype(jnp.bfloat16), Lp


# ----------------------------------------------------------------------------
# Kernel 1: both conv blocks (+ PE), fully fused, single invocation
# ----------------------------------------------------------------------------
def conv_stack_kernel(xc1_ref, w1_ref, b1_ref, g1_ref, be1_ref,
                      w2_ref, b2_ref, g2_ref, be2_ref, pos_ref, o_ref, *,
                      B, Lp1, eps):
    K2, S2, P2 = 3, 2, 2
    BL1 = B * Lp1
    C1 = w1_ref.shape[1]
    D = w2_ref.shape[1]

    # --- conv block 1: one merged even+odd matmul -> maxpool -> bias -> leaky -> LN
    y = jnp.dot(xc1_ref[...], w1_ref[...], preferred_element_type=jnp.float32)
    z = jnp.maximum(y[:BL1], y[BL1:]) + b1_ref[...]
    z = jnp.where(z >= 0.0, z, 0.01 * z)                        # LeakyReLU(0.01)
    z = _ln(z, g1_ref[...], be1_ref[...], eps)                  # (B*Lp1, C1)
    z1 = z.reshape(B, Lp1, C1)

    # --- conv block 2: windows built in-kernel (activation never leaves VMEM)
    Lc2 = (Lp1 - K2) // S2 + 1
    Lp2 = (Lc2 - P2) // P2 + 1
    step = S2 * P2

    def rows(off):
        return [jnp.concatenate([z1[:, off + j * step + k, :] for k in range(K2)],
                                axis=-1)
                for j in range(Lp2)]                            # Lp2 x (B, K2*C1)

    xc2 = jnp.concatenate(rows(0) + rows(S2), axis=0)           # (2*Lp2*B, K2*C1)
    y2 = jnp.dot(xc2.astype(jnp.bfloat16), w2_ref[...],
                 preferred_element_type=jnp.float32)
    BL2 = Lp2 * B
    z2 = jnp.maximum(y2[:BL2], y2[BL2:]) + b2_ref[...]
    z2 = jnp.where(z2 >= 0.0, z2, 0.01 * z2)
    z2 = _ln(z2, g2_ref[...], be2_ref[...], eps)                # (Lp2*B, D)

    # (L4, B, D) layout directly + sinusoidal positional encoding per L4 position
    o_ref[...] = z2.reshape(Lp2, B, D) + pos_ref[...]


def conv_stack(xcat1, p, *, B, Lp1, eps):
    D = p['w2m'].shape[1]
    L4 = p['pos'].shape[0]
    return pl.pallas_call(
        functools.partial(conv_stack_kernel, B=B, Lp1=Lp1, eps=eps),
        out_shape=jax.ShapeDtypeStruct((L4, B, D), jnp.float32),
        in_specs=[_vmem_spec()] * 10,
        out_specs=_vmem_spec(),
    )(xcat1, p['w1m'], p['b1'], p['ln1_g'], p['ln1_b'],
      p['w2m'], p['b2'], p['ln2_g'], p['ln2_b'], p['pos'])


# ----------------------------------------------------------------------------
# Kernel 2: TransformerEncoder stack + final LN + w_avg pool + Linear + Sigmoid
# ----------------------------------------------------------------------------
def encoder_head_kernel(xt_ref, wqkv_ref, bqkv_ref, wo_ref, bo_ref,
                        w1_ref, b1_ref, w2_ref, b2_ref,
                        g1_ref, be1_ref, g2_ref, be2_ref,
                        gf_ref, bf_ref, wavg_ref, wlin_ref, blin_ref,
                        o_ref, acc_ref, *, nhead, eps):
    l = pl.program_id(0)
    L4, B, D = acc_ref.shape
    LB = L4 * B
    hd = D // nhead
    scale = 1.0 / math.sqrt(hd)

    @pl.when(l == 0)
    def _():
        acc_ref[...] = xt_ref[...]

    x3 = acc_ref[...]                                           # (L4, B, D) f32
    x2 = x3.reshape(LB, D)

    # --- multi-head self-attention: full-width QKV projection over all rows
    qkv = jnp.dot(x2.astype(jnp.bfloat16), wqkv_ref[0],
                  preferred_element_type=jnp.float32) + bqkv_ref[0]   # (LB, 3D)
    q = (qkv[:, :D] * scale).reshape(L4, B, D).astype(jnp.bfloat16)
    k = qkv[:, D:2 * D].reshape(L4, B, D).astype(jnp.bfloat16)
    v = qkv[:, 2 * D:].reshape(L4, B, D).astype(jnp.bfloat16)

    # per-head (B x B) score/context matmuls, batched over the L4 positions
    ctx_heads = []
    for h in range(nhead):
        sl = slice(h * hd, (h + 1) * hd)
        s = jax.lax.dot_general(q[..., sl], k[..., sl],
                                (((2,), (2,)), ((0,), (0,))),
                                preferred_element_type=jnp.float32)   # (L4, B, B)
        s = s - jnp.max(s, axis=-1, keepdims=True)
        pw = jnp.exp(s)
        pw = pw * pl.reciprocal(jnp.sum(pw, axis=-1, keepdims=True), approx=True)
        ctx_heads.append(jax.lax.dot_general(pw.astype(jnp.bfloat16), v[..., sl],
                                             (((2,), (1,)), ((0,), (0,))),
                                             preferred_element_type=jnp.float32))
    ctx = jnp.concatenate(ctx_heads, axis=-1).reshape(LB, D)
    attn = jnp.dot(ctx.astype(jnp.bfloat16), wo_ref[0],
                   preferred_element_type=jnp.float32) + bo_ref[0]

    x2 = _ln(x2 + attn, g1_ref[0], be1_ref[0], eps)

    # --- feed-forward (ReLU), batched over all L4*B rows
    h1 = jnp.maximum(jnp.dot(x2.astype(jnp.bfloat16), w1_ref[0],
                             preferred_element_type=jnp.float32) + b1_ref[0], 0.0)
    ff = jnp.dot(h1.astype(jnp.bfloat16), w2_ref[0],
                 preferred_element_type=jnp.float32) + b2_ref[0]
    x2 = _ln(x2 + ff, g2_ref[0], be2_ref[0], eps)

    acc_ref[...] = x2.reshape(L4, B, D)

    # --- fused head epilogue on the last layer: final LN + pool + linear + sigmoid
    @pl.when(l == pl.num_programs(0) - 1)
    def _():
        xf = _ln(x2, gf_ref[...], bf_ref[...], eps).reshape(L4, B, D)
        pooled = jnp.sum(xf * wavg_ref[...], axis=0)                  # (B, D)
        logits = jnp.sum(pooled * wlin_ref[...], axis=-1,
                         keepdims=True) + blin_ref[...]               # (B, 1)
        o_ref[...] = 1.0 / (1.0 + jnp.exp(-logits))


def encoder_head(xt, p, *, nhead, eps):
    L4, B, D = xt.shape
    enc = p['enc']
    n_layers = enc['wqkv'].shape[0]
    names = ['wqkv', 'bqkv', 'wo', 'bo', 'w1', 'b1', 'w2', 'b2',
             'g1', 'be1', 'g2', 'be2']

    def layer_spec(a):
        nd = a.ndim
        return pl.BlockSpec((1,) + a.shape[1:],
                            lambda l, nd=nd: (l,) + (0,) * (nd - 1))

    def const_spec(a):
        nd = a.ndim
        return pl.BlockSpec(a.shape, lambda l, nd=nd: (0,) * nd)

    head_args = [p['lnf_g'], p['lnf_b'], p['w_avg'], p['w_lin'], p['b_lin']]
    args = [xt] + [enc[n] for n in names] + head_args
    in_specs = [const_spec(xt)] + [layer_spec(enc[n]) for n in names] + \
               [const_spec(a) for a in head_args]

    return pl.pallas_call(
        functools.partial(encoder_head_kernel, nhead=nhead, eps=eps),
        out_shape=jax.ShapeDtypeStruct((B, 1), jnp.float32),
        grid=(n_layers,),
        in_specs=in_specs,
        out_specs=pl.BlockSpec((B, 1), lambda l: (0, 0)),
        scratch_shapes=[pltpu.VMEM((L4, B, D), jnp.float32)],
        compiler_params=pltpu.CompilerParams(
            dimension_semantics=("arbitrary",),
            # keep double-buffered per-layer weights well under v7x's 64 MiB VMEM
            vmem_limit_bytes=32 * 1024 * 1024),
    )(*args)


# ----------------------------------------------------------------------------
# parameters & full forward
# ----------------------------------------------------------------------------
def init_params(key, in_channels, d_model, nhead, n_layers, dff, max_seq_length):
    c_half = d_model // 2
    L1 = conv_len(max_seq_length, 3, 2)
    L2 = conv_len(L1, 2, 2)
    L3 = conv_len(L2, 3, 2)
    L4 = conv_len(L3, 2, 2)

    keys = iter(jax.random.split(key, 96))

    def nrm(shape, scale=0.1):
        return scale * jax.random.normal(next(keys), shape, dtype=jnp.float32)

    p = {}
    # Conv1d weights: PyTorch (Cout, Cin, K) -> im2col matmul weight (K*Cin, Cout)
    w_c1 = nrm((c_half, in_channels, 3))
    p['w1m'] = jnp.transpose(w_c1, (2, 1, 0)).reshape(3 * in_channels, c_half) \
        .astype(jnp.bfloat16)
    p['b1'] = nrm((1, c_half))
    p['ln1_g'] = 1.0 + nrm((1, c_half), 0.05)
    p['ln1_b'] = nrm((1, c_half), 0.05)

    w_c2 = nrm((d_model, c_half, 3))
    p['w2m'] = jnp.transpose(w_c2, (2, 1, 0)).reshape(3 * c_half, d_model) \
        .astype(jnp.bfloat16)
    p['b2'] = nrm((1, d_model))
    p['ln2_g'] = 1.0 + nrm((1, d_model), 0.05)
    p['ln2_b'] = nrm((1, d_model), 0.05)

    # Transformer encoder layers: full-width [Wq|Wk|Wv] (D,3D), Wo (D,D),
    # stacked on a leading layer axis so the whole stack is one pallas_call.
    D = d_model
    enc = {k: [] for k in ['wqkv', 'bqkv', 'wo', 'bo', 'w1', 'b1', 'w2', 'b2',
                           'g1', 'be1', 'g2', 'be2']}
    for _ in range(n_layers):
        wq, wk, wv = nrm((D, D)), nrm((D, D)), nrm((D, D))
        bq, bk, bv = nrm((D,)), nrm((D,)), nrm((D,))
        enc['wqkv'].append(jnp.concatenate([wq, wk, wv], axis=1))        # (D, 3D)
        enc['bqkv'].append(jnp.concatenate([bq, bk, bv])[None, :])       # (1, 3D)
        enc['wo'].append(nrm((D, D)))
        enc['bo'].append(nrm((1, D)))
        enc['w1'].append(nrm((D, dff)))
        enc['b1'].append(nrm((1, dff)))
        enc['w2'].append(nrm((dff, D)))
        enc['b2'].append(nrm((1, D)))
        enc['g1'].append(1.0 + nrm((1, D), 0.05))
        enc['be1'].append(nrm((1, D), 0.05))
        enc['g2'].append(1.0 + nrm((1, D), 0.05))
        enc['be2'].append(nrm((1, D), 0.05))
    bf16_names = {'wqkv', 'wo', 'w1', 'w2'}
    p['enc'] = {k: jnp.stack(v, axis=0).astype(
        jnp.bfloat16 if k in bf16_names else jnp.float32)
        for k, v in enc.items()}

    # final TransformerEncoder LayerNorm + classifier head
    p['lnf_g'] = 1.0 + nrm((1, D), 0.05)
    p['lnf_b'] = nrm((1, D), 0.05)
    p['w_avg'] = nrm((L4, 1, D), 0.3)                # torch w_avg (1, L4, D) -> (L4,1,D)
    p['w_lin'] = nrm((1, D))                          # Linear(D,1).weight as row vector
    p['b_lin'] = nrm((1, 1))
    p['pos'] = sinusoidal_pe(max_seq_length, D)[:L4][:, None, :]   # (L4, 1, D)
    return p


def orpheus3_forward(x_ncl, p, *, nhead, eps=1e-5):
    x = jnp.transpose(x_ncl, (0, 2, 1))               # (B, L, Cin) channels-last
    B = x.shape[0]
    # conv block 1 im2col (raw input only; block 2 windows are built in-kernel)
    xcat1, Lp1 = im2col_pooled_flat(x, 3, 2, 2)       # (2*B*Lp1, 3*Cin) bf16
    # fused conv blocks 1+2 (+ PE), output already in (L4, B, D) layout
    z2t = conv_stack(xcat1, p, B=B, Lp1=Lp1, eps=eps)
    # transformer encoder stack + final LN + w_avg pooling + Linear + Sigmoid
    probs = encoder_head(z2t, p, nhead=nhead, eps=eps)            # (B, 1)
    return jnp.squeeze(probs, axis=-1)                            # (B,)


if __name__ == "__main__":
    B, in_channels, max_seq_length = 2, 4, 64
    d_model, nhead, n_layers, dff = 32, 4, 2, 64

    key = jax.random.PRNGKey(0)
    kx, kp = jax.random.split(key)
    x = jax.random.normal(kx, (B, in_channels, max_seq_length), dtype=jnp.float32)
    params = init_params(kp, in_channels, d_model, nhead, n_layers, dff,
                         max_seq_length)

    fwd = jax.jit(functools.partial(orpheus3_forward, nhead=nhead))
    out = jax.block_until_ready(fwd(x, params))
    assert out.shape == (B,), out.shape
    assert bool(jnp.all(jnp.isfinite(out)))
    assert bool(jnp.all((out >= 0.0) & (out <= 1.0)))
    print("KERNEL_OK")
</pallas_src>

<mosaic_0001>
module attributes {stable_mosaic.version = 11 : i64} {
  func.func @conv_stack_kernel(%arg0: memref<60x12xbf16, #tpu.memory_space<vmem>>, %arg1: memref<12x16xbf16, #tpu.memory_space<vmem>>, %arg2: memref<1x16xf32, #tpu.memory_space<vmem>>, %arg3: memref<1x16xf32, #tpu.memory_space<vmem>>, %arg4: memref<1x16xf32, #tpu.memory_space<vmem>>, %arg5: memref<48x32xbf16, #tpu.memory_space<vmem>>, %arg6: memref<1x32xf32, #tpu.memory_space<vmem>>, %arg7: memref<1x32xf32, #tpu.memory_space<vmem>>, %arg8: memref<1x32xf32, #tpu.memory_space<vmem>>, %arg9: memref<3x1x32xf32, #tpu.memory_space<vmem>>, %arg10: memref<3x2x32xf32, #tpu.memory_space<vmem>>) attributes {dimension_semantics = [], scalar_prefetch = 0 : i64, scratch_operands = 0 : i64, tpu.core_type = #tpu.core_type<tc>} {
    %c0 = arith.constant 0 : index
    %c0_0 = arith.constant 0 : index
    %0 = vector.load %arg0[%c0, %c0_0] : memref<60x12xbf16, #tpu.memory_space<vmem>>, vector<60x12xbf16>
    %c0_1 = arith.constant 0 : index
    %c0_2 = arith.constant 0 : index
    %1 = vector.load %arg1[%c0_1, %c0_2] : memref<12x16xbf16, #tpu.memory_space<vmem>>, vector<12x16xbf16>
    %cst = arith.constant dense<0.000000e+00> : vector<60x16xf32>
    %2 = tpu.matmul %0, %1, %cst {dimension_numbers = #tpu.dot_dimension_numbers<[1], [0], [0], [1], [0, 0, 1, 1], [], []>} : vector<60x12xbf16>, vector<12x16xbf16>, vector<60x16xf32> -> vector<60x16xf32>
    %3 = vector.extract_strided_slice %2 {offsets = [0, 0], sizes = [30, 16], strides = [1, 1]} : vector<60x16xf32> to vector<30x16xf32>
    %4 = vector.extract_strided_slice %2 {offsets = [30, 0], sizes = [30, 16], strides = [1, 1]} : vector<60x16xf32> to vector<30x16xf32>
    %5 = arith.maximumf %3, %4 : vector<30x16xf32>
    %c0_3 = arith.constant 0 : index
    %c0_4 = arith.constant 0 : index
    %6 = vector.load %arg2[%c0_3, %c0_4] : memref<1x16xf32, #tpu.memory_space<vmem>>, vector<1x16xf32>
    %7 = vector.broadcast %6 : vector<1x16xf32> to vector<30x16xf32>
    %8 = arith.addf %5, %7 : vector<30x16xf32>
    %cst_5 = arith.constant 0.000000e+00 : f32
    %9 = vector.broadcast %cst_5 : f32 to vector<30x16xf32>
    %10 = arith.cmpf oge, %8, %9 : vector<30x16xf32>
    %cst_6 = arith.constant 0.00999999977 : f32
    %11 = vector.broadcast %cst_6 : f32 to vector<30x16xf32>
    %12 = arith.mulf %11, %8 : vector<30x16xf32>
    %13 = arith.select %10, %8, %12 : vector<30x16xi1>, vector<30x16xf32>
    %c0_7 = arith.constant 0 : index
    %c0_8 = arith.constant 0 : index
    %14 = vector.load %arg3[%c0_7, %c0_8] : memref<1x16xf32, #tpu.memory_space<vmem>>, vector<1x16xf32>
    %c0_9 = arith.constant 0 : index
    %c0_10 = arith.constant 0 : index
    %15 = vector.load %arg4[%c0_9, %c0_10] : memref<1x16xf32, #tpu.memory_space<vmem>>, vector<1x16xf32>
    %cst_11 = arith.constant dense<0.000000e+00> : vector<30xf32>
    %16 = vector.multi_reduction <add>, %13, %cst_11 [1] : vector<30x16xf32> to vector<30xf32>
    %17 = vector.shape_cast %16 : vector<30xf32> to vector<30x1xf32>
    %cst_12 = arith.constant 1.600000e+01 : f32
    %18 = vector.broadcast %cst_12 : f32 to vector<30x1xf32>
    %19 = arith.divf %17, %18 : vector<30x1xf32>
    %20 = vector.broadcast %19 : vector<30x1xf32> to vector<30x16xf32>
    %21 = arith.subf %13, %20 : vector<30x16xf32>
    %22 = arith.mulf %21, %21 : vector<30x16xf32>
    %cst_13 = arith.constant dense<0.000000e+00> : vector<30xf32>
    %23 = vector.multi_reduction <add>, %22, %cst_13 [1] : vector<30x16xf32> to vector<30xf32>
    %24 = vector.shape_cast %23 : vector<30xf32> to vector<30x1xf32>
    %cst_14 = arith.constant 1.600000e+01 : f32
    %25 = vector.broadcast %cst_14 : f32 to vector<30x1xf32>
    %26 = arith.divf %24, %25 : vector<30x1xf32>
    %27 = vector.broadcast %19 : vector<30x1xf32> to vector<30x16xf32>
    %28 = arith.subf %13, %27 : vector<30x16xf32>
    %cst_15 = arith.constant 9.99999974E-6 : f32
    %29 = vector.broadcast %cst_15 : f32 to vector<30x1xf32>
    %30 = arith.addf %26, %29 : vector<30x1xf32>
    %31 = math.rsqrt %30 : vector<30x1xf32>
    %32 = vector.broadcast %31 : vector<30x1xf32> to vector<30x16xf32>
    %33 = arith.mulf %28, %32 : vector<30x16xf32>
    %34 = vector.broadcast %14 : vector<1x16xf32> to vector<30x16xf32>
    %35 = arith.mulf %33, %34 : vector<30x16xf32>
    %36 = vector.broadcast %15 : vector<1x16xf32> to vector<30x16xf32>
    %37 = arith.addf %35, %36 : vector<30x16xf32>
    %38 = vector.shape_cast %37 : vector<30x16xf32> to vector<2x15x16xf32>
    %39 = vector.extract_strided_slice %38 {offsets = [0, 0, 0], sizes = [2, 1, 16], strides = [1, 1, 1]} : vector<2x15x16xf32> to vector<2x1x16xf32>
    %40 = vector.shape_cast %39 : vector<2x1x16xf32> to vector<2x16xf32>
    %41 = vector.extract_strided_slice %38 {offsets = [0, 1, 0], sizes = [2, 1, 16], strides = [1, 1, 1]} : vector<2x15x16xf32> to vector<2x1x16xf32>
    %42 = vector.shape_cast %41 : vector<2x1x16xf32> to vector<2x16xf32>
    %43 = vector.extract_strided_slice %38 {offsets = [0, 2, 0], sizes = [2, 1, 16], strides = [1, 1, 1]} : vector<2x15x16xf32> to vector<2x1x16xf32>
    %44 = vector.shape_cast %43 : vector<2x1x16xf32> to vector<2x16xf32>
    %45 = tpu.concatenate %40, %42, %44 in 1 : vector<2x16xf32>, vector<2x16xf32>, vector<2x16xf32> -> vector<2x48xf32>
    %46 = vector.extract_strided_slice %38 {offsets = [0, 4, 0], sizes = [2, 1, 16], strides = [1, 1, 1]} : vector<2x15x16xf32> to vector<2x1x16xf32>
    %47 = vector.shape_cast %46 : vector<2x1x16xf32> to vector<2x16xf32>
    %48 = vector.extract_strided_slice %38 {offsets = [0, 5, 0], sizes = [2, 1, 16], strides = [1, 1, 1]} : vector<2x15x16xf32> to vector<2x1x16xf32>
    %49 = vector.shape_cast %48 : vector<2x1x16xf32> to vector<2x16xf32>
    %50 = vector.extract_strided_slice %38 {offsets = [0, 6, 0], sizes = [2, 1, 16], strides = [1, 1, 1]} : vector<2x15x16xf32> to vector<2x1x16xf32>
    %51 = vector.shape_cast %50 : vector<2x1x16xf32> to vector<2x16xf32>
    %52 = tpu.concatenate %47, %49, %51 in 1 : vector<2x16xf32>, vector<2x16xf32>, vector<2x16xf32> -> vector<2x48xf32>
    %53 = vector.extract_strided_slice %38 {offsets = [0, 8, 0], sizes = [2, 1, 16], strides = [1, 1, 1]} : vector<2x15x16xf32> to vector<2x1x16xf32>
    %54 = vector.shape_cast %53 : vector<2x1x16xf32> to vector<2x16xf32>
    %55 = vector.extract_strided_slice %38 {offsets = [0, 9, 0], sizes = [2, 1, 16], strides = [1, 1, 1]} : vector<2x15x16xf32> to vector<2x1x16xf32>
    %56 = vector.shape_cast %55 : vector<2x1x16xf32> to vector<2x16xf32>
    %57 = vector.extract_strided_slice %38 {offsets = [0, 10, 0], sizes = [2, 1, 16], strides = [1, 1, 1]} : vector<2x15x16xf32> to vector<2x1x16xf32>
    %58 = vector.shape_cast %57 : vector<2x1x16xf32> to vector<2x16xf32>
    %59 = tpu.concatenate %54, %56, %58 in 1 : vector<2x16xf32>, vector<2x16xf32>, vector<2x16xf32> -> vector<2x48xf32>
    %60 = vector.extract_strided_slice %38 {offsets = [0, 2, 0], sizes = [2, 1, 16], strides = [1, 1, 1]} : vector<2x15x16xf32> to vector<2x1x16xf32>
    %61 = vector.shape_cast %60 : vector<2x1x16xf32> to vector<2x16xf32>
    %62 = vector.extract_strided_slice %38 {offsets = [0, 3, 0], sizes = [2, 1, 16], strides = [1, 1, 1]} : vector<2x15x16xf32> to vector<2x1x16xf32>
    %63 = vector.shape_cast %62 : vector<2x1x16xf32> to vector<2x16xf32>
    %64 = vector.extract_strided_slice %38 {offsets = [0, 4, 0], sizes = [2, 1, 16], strides = [1, 1, 1]} : vector<2x15x16xf32> to vector<2x1x16xf32>
    %65 = vector.shape_cast %64 : vector<2x1x16xf32> to vector<2x16xf32>
    %66 = tpu.concatenate %61, %63, %65 in 1 : vector<2x16xf32>, vector<2x16xf32>, vector<2x16xf32> -> vector<2x48xf32>
    %67 = vector.extract_strided_slice %38 {offsets = [0, 6, 0], sizes = [2, 1, 16], strides = [1, 1, 1]} : vector<2x15x16xf32> to vector<2x1x16xf32>
    %68 = vector.shape_cast %67 : vector<2x1x16xf32> to vector<2x16xf32>
    %69 = vector.extract_strided_slice %38 {offsets = [0, 7, 0], sizes = [2, 1, 16], strides = [1, 1, 1]} : vector<2x15x16xf32> to vector<2x1x16xf32>
    %70 = vector.shape_cast %69 : vector<2x1x16xf32> to vector<2x16xf32>
    %71 = vector.extract_strided_slice %38 {offsets = [0, 8, 0], sizes = [2, 1, 16], strides = [1, 1, 1]} : vector<2x15x16xf32> to vector<2x1x16xf32>
    %72 = vector.shape_cast %71 : vector<2x1x16xf32> to vector<2x16xf32>
    %73 = tpu.concatenate %68, %70, %72 in 1 : vector<2x16xf32>, vector<2x16xf32>, vector<2x16xf32> -> vector<2x48xf32>
    %74 = vector.extract_strided_slice %38 {offsets = [0, 10, 0], sizes = [2, 1, 16], strides = [1, 1, 1]} : vector<2x15x16xf32> to vector<2x1x16xf32>
    %75 = vector.shape_cast %74 : vector<2x1x16xf32> to vector<2x16xf32>
    %76 = vector.extract_strided_slice %38 {offsets = [0, 11, 0], sizes = [2, 1, 16], strides = [1, 1, 1]} : vector<2x15x16xf32> to vector<2x1x16xf32>
    %77 = vector.shape_cast %76 : vector<2x1x16xf32> to vector<2x16xf32>
    %78 = vector.extract_strided_slice %38 {offsets = [0, 12, 0], sizes = [2, 1, 16], strides = [1, 1, 1]} : vector<2x15x16xf32> to vector<2x1x16xf32>
    %79 = vector.shape_cast %78 : vector<2x1x16xf32> to vector<2x16xf32>
    %80 = tpu.concatenate %75, %77, %79 in 1 : vector<2x16xf32>, vector<2x16xf32>, vector<2x16xf32> -> vector<2x48xf32>
    %81 = tpu.concatenate %45, %52, %59, %66, %73, %80 in 0 : vector<2x48xf32>, vector<2x48xf32>, vector<2x48xf32>, vector<2x48xf32>, vector<2x48xf32>, vector<2x48xf32> -> vector<12x48xf32>
    %82 = arith.truncf %81 : vector<12x48xf32> to vector<12x48xbf16>
    %c0_16 = arith.constant 0 : index
    %c0_17 = arith.constant 0 : index
    %83 = vector.load %arg5[%c0_16, %c0_17] : memref<48x32xbf16, #tpu.memory_space<vmem>>, vector<48x32xbf16>
    %cst_18 = arith.constant dense<0.000000e+00> : vector<12x32xf32>
    %84 = tpu.matmul %82, %83, %cst_18 {dimension_numbers = #tpu.dot_dimension_numbers<[1], [0], [0], [1], [0, 0, 1, 1], [], []>} : vector<12x48xbf16>, vector<48x32xbf16>, vector<12x32xf32> -> vector<12x32xf32>
    %85 = vector.extract_strided_slice %84 {offsets = [0, 0], sizes = [6, 32], strides = [1, 1]} : vector<12x32xf32> to vector<6x32xf32>
    %86 = vector.extract_strided_slice %84 {offsets = [6, 0], sizes = [6, 32], strides = [1, 1]} : vector<12x32xf32> to vector<6x32xf32>
    %87 = arith.maximumf %85, %86 : vector<6x32xf32>
    %c0_19 = arith.constant 0 : index
    %c0_20 = arith.constant 0 : index
    %88 = vector.load %arg6[%c0_19, %c0_20] : memref<1x32xf32, #tpu.memory_space<vmem>>, vector<1x32xf32>
    %89 = vector.broadcast %88 : vector<1x32xf32> to vector<6x32xf32>
    %90 = arith.addf %87, %89 : vector<6x32xf32>
    %cst_21 = arith.constant 0.000000e+00 : f32
    %91 = vector.broadcast %cst_21 : f32 to vector<6x32xf32>
    %92 = arith.cmpf oge, %90, %91 : vector<6x32xf32>
    %cst_22 = arith.constant 0.00999999977 : f32
    %93 = vector.broadcast %cst_22 : f32 to vector<6x32xf32>
    %94 = arith.mulf %93, %90 : vector<6x32xf32>
    %95 = arith.select %92, %90, %94 : vector<6x32xi1>, vector<6x32xf32>
    %c0_23 = arith.constant 0 : index
    %c0_24 = arith.constant 0 : index
    %96 = vector.load %arg7[%c0_23, %c0_24] : memref<1x32xf32, #tpu.memory_space<vmem>>, vector<1x32xf32>
    %c0_25 = arith.constant 0 : index
    %c0_26 = arith.constant 0 : index
    %97 = vector.load %arg8[%c0_25, %c0_26] : memref<1x32xf32, #tpu.memory_space<vmem>>, vector<1x32xf32>
    %cst_27 = arith.constant dense<0.000000e+00> : vector<6xf32>
    %98 = vector.multi_reduction <add>, %95, %cst_27 [1] : vector<6x32xf32> to vector<6xf32>
    %99 = vector.shape_cast %98 : vector<6xf32> to vector<6x1xf32>
    %cst_28 = arith.constant 3.200000e+01 : f32
    %100 = vector.broadcast %cst_28 : f32 to vector<6x1xf32>
    %101 = arith.divf %99, %100 : vector<6x1xf32>
    %102 = vector.broadcast %101 : vector<6x1xf32> to vector<6x32xf32>
    %103 = arith.subf %95, %102 : vector<6x32xf32>
    %104 = arith.mulf %103, %103 : vector<6x32xf32>
    %cst_29 = arith.constant dense<0.000000e+00> : vector<6xf32>
    %105 = vector.multi_reduction <add>, %104, %cst_29 [1] : vector<6x32xf32> to vector<6xf32>
    %106 = vector.shape_cast %105 : vector<6xf32> to vector<6x1xf32>
    %cst_30 = arith.constant 3.200000e+01 : f32
    %107 = vector.broadcast %cst_30 : f32 to vector<6x1xf32>
    %108 = arith.divf %106, %107 : vector<6x1xf32>
    %109 = vector.broadcast %101 : vector<6x1xf32> to vector<6x32xf32>
    %110 = arith.subf %95, %109 : vector<6x32xf32>
    %cst_31 = arith.constant 9.99999974E-6 : f32
    %111 = vector.broadcast %cst_31 : f32 to vector<6x1xf32>
    %112 = arith.addf %108, %111 : vector<6x1xf32>
    %113 = math.rsqrt %112 : vector<6x1xf32>
    %114 = vector.broadcast %113 : vector<6x1xf32> to vector<6x32xf32>
    %115 = arith.mulf %110, %114 : vector<6x32xf32>
    %116 = vector.broadcast %96 : vector<1x32xf32> to vector<6x32xf32>
    %117 = arith.mulf %115, %116 : vector<6x32xf32>
    %118 = vector.broadcast %97 : vector<1x32xf32> to vector<6x32xf32>
    %119 = arith.addf %117, %118 : vector<6x32xf32>
    %120 = vector.shape_cast %119 : vector<6x32xf32> to vector<3x2x32xf32>
    %c0_32 = arith.constant 0 : index
    %c0_33 = arith.constant 0 : index
    %c0_34 = arith.constant 0 : index
    %121 = vector.load %arg9[%c0_32, %c0_33, %c0_34] : memref<3x1x32xf32, #tpu.memory_space<vmem>>, vector<3x1x32xf32>
    %122 = vector.broadcast %121 : vector<3x1x32xf32> to vector<3x2x32xf32>
    %123 = arith.addf %120, %122 : vector<3x2x32xf32>
    %c0_35 = arith.constant 0 : index
    %c0_36 = arith.constant 0 : index
    %c0_37 = arith.constant 0 : index
    %124 = vector.load %arg10[%c0_35, %c0_36, %c0_37] : memref<3x2x32xf32, #tpu.memory_space<vmem>>, vector<3x2x32xf32>
    tpu.vector_store %arg10[%c0_35, %c0_36, %c0_37], %123 {strides = array<i32>} : memref<3x2x32xf32, #tpu.memory_space<vmem>>, vector<3x2x32xf32>,
    return
  }
}

module attributes {stable_mosaic.version = 11 : i64} {
  func.func @encoder_head_kernel(%arg0: i32, %arg1: memref<3x2x32xf32, #tpu.memory_space<vmem>>, %arg2: memref<1x32x96xbf16, #tpu.memory_space<vmem>>, %arg3: memref<1x1x96xf32, #tpu.memory_space<vmem>>, %arg4: memref<1x32x32xbf16, #tpu.memory_space<vmem>>, %arg5: memref<1x1x32xf32, #tpu.memory_space<vmem>>, %arg6: memref<1x32x64xbf16, #tpu.memory_space<vmem>>, %arg7: memref<1x1x64xf32, #tpu.memory_space<vmem>>, %arg8: memref<1x64x32xbf16, #tpu.memory_space<vmem>>, %arg9: memref<1x1x32xf32, #tpu.memory_space<vmem>>, %arg10: memref<1x1x32xf32, #tpu.memory_space<vmem>>, %arg11: memref<1x1x32xf32, #tpu.memory_space<vmem>>, %arg12: memref<1x1x32xf32, #tpu.memory_space<vmem>>, %arg13: memref<1x1x32xf32, #tpu.memory_space<vmem>>, %arg14: memref<1x32xf32, #tpu.memory_space<vmem>>, %arg15: memref<1x32xf32, #tpu.memory_space<vmem>>, %arg16: memref<3x1x32xf32, #tpu.memory_space<vmem>>, %arg17: memref<1x32xf32, #tpu.memory_space<vmem>>, %arg18: memref<1x1xf32, #tpu.memory_space<vmem>>, %arg19: memref<2x1xf32, #tpu.memory_space<vmem>>, %arg20: memref<3x2x32xf32, #tpu.memory_space<vmem>>) attributes {dimension_semantics = [#tpu.dimension_semantics<arbitrary>], iteration_bounds = array<i64: 2>, scalar_prefetch = 0 : i64, scratch_operands = 1 : i64, tpu.core_type = #tpu.core_type<tc>, window_params = [{pipeline_mode = #tpu.pipeline_mode<synchronous>, transform_indices = @transform_0, window_bounds = array<i64: 3, 2, 32>}, {transform_indices = @transform_1, window_bounds = array<i64: 1, 32, 96>}, {transform_indices = @transform_2, window_bounds = array<i64: 1, 1, 96>}, {transform_indices = @transform_3, window_bounds = array<i64: 1, 32, 32>}, {transform_indices = @transform_4, window_bounds = array<i64: 1, 1, 32>}, {transform_indices = @transform_5, window_bounds = array<i64: 1, 32, 64>}, {transform_indices = @transform_6, window_bounds = array<i64: 1, 1, 64>}, {transform_indices = @transform_7, window_bounds = array<i64: 1, 64, 32>}, {transform_indices = @transform_8, window_bounds = array<i64: 1, 1, 32>}, {transform_indices = @transform_9, window_bounds = array<i64: 1, 1, 32>}, {transform_indices = @transform_10, window_bounds = array<i64: 1, 1, 32>}, {transform_indices = @transform_11, window_bounds = array<i64: 1, 1, 32>}, {transform_indices = @transform_12, window_bounds = array<i64: 1, 1, 32>}, {pipeline_mode = #tpu.pipeline_mode<synchronous>, transform_indices = @transform_13, window_bounds = array<i64: 1, 32>}, {pipeline_mode = #tpu.pipeline_mode<synchronous>, transform_indices = @transform_14, window_bounds = array<i64: 1, 32>}, {pipeline_mode = #tpu.pipeline_mode<synchronous>, transform_indices = @transform_15, window_bounds = array<i64: 3, 1, 32>}, {pipeline_mode = #tpu.pipeline_mode<synchronous>, transform_indices = @transform_16, window_bounds = array<i64: 1, 32>}, {pipeline_mode = #tpu.pipeline_mode<synchronous>, transform_indices = @transform_17, window_bounds = array<i64: 1, 1>}, {pipeline_mode = #tpu.pipeline_mode<synchronous>, transform_indices = @transform_18, window_bounds = array<i64: 2, 1>}]} {
    %c0_i32 = arith.constant 0 : i32
    %0 = arith.cmpi eq, %arg0, %c0_i32 : i32
    %1 = arith.extui %0 : i1 to i32
    %c0_i32_0 = arith.constant 0 : i32
    %2 = arith.cmpi ne, %1, %c0_i32_0 : i32
    scf.if %2 {
      %c0_74 = arith.constant 0 : index
      %c0_75 = arith.constant 0 : index
      %c0_76 = arith.constant 0 : index
      %175 = vector.load %arg1[%c0_74, %c0_75, %c0_76] : memref<3x2x32xf32, #tpu.memory_space<vmem>>, vector<3x2x32xf32>
      %c0_77 = arith.constant 0 : index
      %c0_78 = arith.constant 0 : index
      %c0_79 = arith.constant 0 : index
      %176 = vector.load %arg20[%c0_77, %c0_78, %c0_79] : memref<3x2x32xf32, #tpu.memory_space<vmem>>, vector<3x2x32xf32>
      tpu.vector_store %arg20[%c0_77, %c0_78, %c0_79], %175 {strides = array<i32>} : memref<3x2x32xf32, #tpu.memory_space<vmem>>, vector<3x2x32xf32>,
    } else {
    }
    %c0 = arith.constant 0 : index
    %c0_1 = arith.constant 0 : index
    %c0_2 = arith.constant 0 : index
    %3 = vector.load %arg20[%c0, %c0_1, %c0_2] : memref<3x2x32xf32, #tpu.memory_space<vmem>>, vector<3x2x32xf32>
    %4 = vector.shape_cast %3 : vector<3x2x32xf32> to vector<6x32xf32>
    %5 = arith.truncf %4 : vector<6x32xf32> to vector<6x32xbf16>
    %c0_3 = arith.constant 0 : index
    %c0_4 = arith.constant 0 : index
    %c0_5 = arith.constant 0 : index
    %6 = vector.load %arg2[%c0_3, %c0_4, %c0_5] : memref<1x32x96xbf16, #tpu.memory_space<vmem>>, vector<1x32x96xbf16>
    %7 = vector.shape_cast %6 : vector<1x32x96xbf16> to vector<32x96xbf16>
    %cst = arith.constant dense<0.000000e+00> : vector<6x96xf32>
    %8 = tpu.matmul %5, %7, %cst {dimension_numbers = #tpu.dot_dimension_numbers<[1], [0], [0], [1], [0, 0, 1, 1], [], []>} : vector<6x32xbf16>, vector<32x96xbf16>, vector<6x96xf32> -> vector<6x96xf32>
    %c0_6 = arith.constant 0 : index
    %c0_7 = arith.constant 0 : index
    %c0_8 = arith.constant 0 : index
    %9 = vector.load %arg3[%c0_6, %c0_7, %c0_8] : memref<1x1x96xf32, #tpu.memory_space<vmem>>, vector<1x1x96xf32>
    %10 = vector.shape_cast %9 : vector<1x1x96xf32> to vector<1x96xf32>
    %11 = vector.broadcast %10 : vector<1x96xf32> to vector<6x96xf32>
    %12 = arith.addf %8, %11 : vector<6x96xf32>
    %13 = vector.extract_strided_slice %12 {offsets = [0, 0], sizes = [6, 32], strides = [1, 1]} : vector<6x96xf32> to vector<6x32xf32>
    %cst_9 = arith.constant 0.353553385 : f32
    %14 = vector.broadcast %cst_9 : f32 to vector<6x32xf32>
    %15 = arith.mulf %13, %14 : vector<6x32xf32>
    %16 = vector.shape_cast %15 : vector<6x32xf32> to vector<3x2x32xf32>
    %17 = arith.truncf %16 : vector<3x2x32xf32> to vector<3x2x32xbf16>
    %18 = vector.extract_strided_slice %12 {offsets = [0, 32], sizes = [6, 32], strides = [1, 1]} : vector<6x96xf32> to vector<6x32xf32>
    %19 = vector.shape_cast %18 : vector<6x32xf32> to vector<3x2x32xf32>
    %20 = arith.truncf %19 : vector<3x2x32xf32> to vector<3x2x32xbf16>
    %21 = vector.extract_strided_slice %12 {offsets = [0, 64], sizes = [6, 32], strides = [1, 1]} : vector<6x96xf32> to vector<6x32xf32>
    %22 = vector.shape_cast %21 : vector<6x32xf32> to vector<3x2x32xf32>
    %23 = arith.truncf %22 : vector<3x2x32xf32> to vector<3x2x32xbf16>
    %24 = vector.extract_strided_slice %17 {offsets = [0, 0, 0], sizes = [3, 2, 8], strides = [1, 1, 1]} : vector<3x2x32xbf16> to vector<3x2x8xbf16>
    %25 = vector.extract_strided_slice %20 {offsets = [0, 0, 0], sizes = [3, 2, 8], strides = [1, 1, 1]} : vector<3x2x32xbf16> to vector<3x2x8xbf16>
    %cst_10 = arith.constant dense<0.000000e+00> : vector<3x2x2xf32>
    %26 = tpu.matmul %24, %25, %cst_10 {dimension_numbers = #tpu.dot_dimension_numbers<[2], [2], [1], [1], [0, 0, 0, 1, 1, 1], [0], [0]>} : vector<3x2x8xbf16>, vector<3x2x8xbf16>, vector<3x2x2xf32> -> vector<3x2x2xf32>
    %cst_11 = arith.constant dense<0xFF800000> : vector<3x2xf32>
    %27 = vector.multi_reduction <maximumf>, %26, %cst_11 [2] : vector<3x2x2xf32> to vector<3x2xf32>
    %28 = vector.shape_cast %27 : vector<3x2xf32> to vector<3x2x1xf32>
    %29 = vector.broadcast %28 : vector<3x2x1xf32> to vector<3x2x2xf32>
    %30 = arith.subf %26, %29 : vector<3x2x2xf32>
    %31 = math.exp %30 : vector<3x2x2xf32>
    %cst_12 = arith.constant dense<0.000000e+00> : vector<3x2xf32>
    %32 = vector.multi_reduction <add>, %31, %cst_12 [2] : vector<3x2x2xf32> to vector<3x2xf32>
    %33 = vector.shape_cast %32 : vector<3x2xf32> to vector<3x2x1xf32>
    %34 = tpu.reciprocal %33 {approx = true} : vector<3x2x1xf32> -> vector<3x2x1xf32>
    %35 = vector.broadcast %34 : vector<3x2x1xf32> to vector<3x2x2xf32>
    %36 = arith.mulf %31, %35 : vector<3x2x2xf32>
    %37 = arith.truncf %36 : vector<3x2x2xf32> to vector<3x2x2xbf16>
    %38 = vector.extract_strided_slice %23 {offsets = [0, 0, 0], sizes = [3, 2, 8], strides = [1, 1, 1]} : vector<3x2x32xbf16> to vector<3x2x8xbf16>
    %cst_13 = arith.constant dense<0.000000e+00> : vector<3x2x8xf32>
    %39 = tpu.matmul %37, %38, %cst_13 {dimension_numbers = #tpu.dot_dimension_numbers<[2], [1], [1], [2], [0, 0, 0, 1, 1, 2], [0], [0]>} : vector<3x2x2xbf16>, vector<3x2x8xbf16>, vector<3x2x8xf32> -> vector<3x2x8xf32>
    %40 = vector.extract_strided_slice %17 {offsets = [0, 0, 8], sizes = [3, 2, 8], strides = [1, 1, 1]} : vector<3x2x32xbf16> to vector<3x2x8xbf16>
    %41 = vector.extract_strided_slice %20 {offsets = [0, 0, 8], sizes = [3, 2, 8], strides = [1, 1, 1]} : vector<3x2x32xbf16> to vector<3x2x8xbf16>
    %cst_14 = arith.constant dense<0.000000e+00> : vector<3x2x2xf32>
    %42 = tpu.matmul %40, %41, %cst_14 {dimension_numbers = #tpu.dot_dimension_numbers<[2], [2], [1], [1], [0, 0, 0, 1, 1, 1], [0], [0]>} : vector<3x2x8xbf16>, vector<3x2x8xbf16>, vector<3x2x2xf32> -> vector<3x2x2xf32>
    %cst_15 = arith.constant dense<0xFF800000> : vector<3x2xf32>
    %43 = vector.multi_reduction <maximumf>, %42, %cst_15 [2] : vector<3x2x2xf32> to vector<3x2xf32>
    %44 = vector.shape_cast %43 : vector<3x2xf32> to vector<3x2x1xf32>
    %45 = vector.broadcast %44 : vector<3x2x1xf32> to vector<3x2x2xf32>
    %46 = arith.subf %42, %45 : vector<3x2x2xf32>
    %47 = math.exp %46 : vector<3x2x2xf32>
    %cst_16 = arith.constant dense<0.000000e+00> : vector<3x2xf32>
    %48 = vector.multi_reduction <add>, %47, %cst_16 [2] : vector<3x2x2xf32> to vector<3x2xf32>
    %49 = vector.shape_cast %48 : vector<3x2xf32> to vector<3x2x1xf32>
    %50 = tpu.reciprocal %49 {approx = true} : vector<3x2x1xf32> -> vector<3x2x1xf32>
    %51 = vector.broadcast %50 : vector<3x2x1xf32> to vector<3x2x2xf32>
    %52 = arith.mulf %47, %51 : vector<3x2x2xf32>
    %53 = arith.truncf %52 : vector<3x2x2xf32> to vector<3x2x2xbf16>
    %54 = vector.extract_strided_slice %23 {offsets = [0, 0, 8], sizes = [3, 2, 8], strides = [1, 1, 1]} : vector<3x2x32xbf16> to vector<3x2x8xbf16>
    %cst_17 = arith.constant dense<0.000000e+00> : vector<3x2x8xf32>
    %55 = tpu.matmul %53, %54, %cst_17 {dimension_numbers = #tpu.dot_dimension_numbers<[2], [1], [1], [2], [0, 0, 0, 1, 1, 2], [0], [0]>} : vector<3x2x2xbf16>, vector<3x2x8xbf16>, vector<3x2x8xf32> -> vector<3x2x8xf32>
    %56 = vector.extract_strided_slice %17 {offsets = [0, 0, 16], sizes = [3, 2, 8], strides = [1, 1, 1]} : vector<3x2x32xbf16> to vector<3x2x8xbf16>
    %57 = vector.extract_strided_slice %20 {offsets = [0, 0, 16], sizes = [3, 2, 8], strides = [1, 1, 1]} : vector<3x2x32xbf16> to vector<3x2x8xbf16>
    %cst_18 = arith.constant dense<0.000000e+00> : vector<3x2x2xf32>
    %58 = tpu.matmul %56, %57, %cst_18 {dimension_numbers = #tpu.dot_dimension_numbers<[2], [2], [1], [1], [0, 0, 0, 1, 1, 1], [0], [0]>} : vector<3x2x8xbf16>, vector<3x2x8xbf16>, vector<3x2x2xf32> -> vector<3x2x2xf32>
    %cst_19 = arith.constant dense<0xFF800000> : vector<3x2xf32>
    %59 = vector.multi_reduction <maximumf>, %58, %cst_19 [2] : vector<3x2x2xf32> to vector<3x2xf32>
    %60 = vector.shape_cast %59 : vector<3x2xf32> to vector<3x2x1xf32>
    %61 = vector.broadcast %60 : vector<3x2x1xf32> to vector<3x2x2xf32>
    %62 = arith.subf %58, %61 : vector<3x2x2xf32>
    %63 = math.exp %62 : vector<3x2x2xf32>
    %cst_20 = arith.constant dense<0.000000e+00> : vector<3x2xf32>
    %64 = vector.multi_reduction <add>, %63, %cst_20 [2] : vector<3x2x2xf32> to vector<3x2xf32>
    %65 = vector.shape_cast %64 : vector<3x2xf32> to vector<3x2x1xf32>
    %66 = tpu.reciprocal %65 {approx = true} : vector<3x2x1xf32> -> vector<3x2x1xf32>
    %67 = vector.broadcast %66 : vector<3x2x1xf32> to vector<3x2x2xf32>
    %68 = arith.mulf %63, %67 : vector<3x2x2xf32>
    %69 = arith.truncf %68 : vector<3x2x2xf32> to vector<3x2x2xbf16>
    %70 = vector.extract_strided_slice %23 {offsets = [0, 0, 16], sizes = [3, 2, 8], strides = [1, 1, 1]} : vector<3x2x32xbf16> to vector<3x2x8xbf16>
    %cst_21 = arith.constant dense<0.000000e+00> : vector<3x2x8xf32>
    %71 = tpu.matmul %69, %70, %cst_21 {dimension_numbers = #tpu.dot_dimension_numbers<[2], [1], [1], [2], [0, 0, 0, 1, 1, 2], [0], [0]>} : vector<3x2x2xbf16>, vector<3x2x8xbf16>, vector<3x2x8xf32> -> vector<3x2x8xf32>
    %72 = vector.extract_strided_slice %17 {offsets = [0, 0, 24], sizes = [3, 2, 8], strides = [1, 1, 1]} : vector<3x2x32xbf16> to vector<3x2x8xbf16>
    %73 = vector.extract_strided_slice %20 {offsets = [0, 0, 24], sizes = [3, 2, 8], strides = [1, 1, 1]} : vector<3x2x32xbf16> to vector<3x2x8xbf16>
    %cst_22 = arith.constant dense<0.000000e+00> : vector<3x2x2xf32>
    %74 = tpu.matmul %72, %73, %cst_22 {dimension_numbers = #tpu.dot_dimension_numbers<[2], [2], [1], [1], [0, 0, 0, 1, 1, 1], [0], [0]>} : vector<3x2x8xbf16>, vector<3x2x8xbf16>, vector<3x2x2xf32> -> vector<3x2x2xf32>
    %cst_23 = arith.constant dense<0xFF800000> : vector<3x2xf32>
    %75 = vector.multi_reduction <maximumf>, %74, %cst_23 [2] : vector<3x2x2xf32> to vector<3x2xf32>
    %76 = vector.shape_cast %75 : vector<3x2xf32> to vector<3x2x1xf32>
    %77 = vector.broadcast %76 : vector<3x2x1xf32> to vector<3x2x2xf32>
    %78 = arith.subf %74, %77 : vector<3x2x2xf32>
    %79 = math.exp %78 : vector<3x2x2xf32>
    %cst_24 = arith.constant dense<0.000000e+00> : vector<3x2xf32>
    %80 = vector.multi_reduction <add>, %79, %cst_24 [2] : vector<3x2x2xf32> to vector<3x2xf32>
    %81 = vector.shape_cast %80 : vector<3x2xf32> to vector<3x2x1xf32>
    %82 = tpu.reciprocal %81 {approx = true} : vector<3x2x1xf32> -> vector<3x2x1xf32>
    %83 = vector.broadcast %82 : vector<3x2x1xf32> to vector<3x2x2xf32>
    %84 = arith.mulf %79, %83 : vector<3x2x2xf32>
    %85 = arith.truncf %84 : vector<3x2x2xf32> to vector<3x2x2xbf16>
    %86 = vector.extract_strided_slice %23 {offsets = [0, 0, 24], sizes = [3, 2, 8], strides = [1, 1, 1]} : vector<3x2x32xbf16> to vector<3x2x8xbf16>
    %cst_25 = arith.constant dense<0.000000e+00> : vector<3x2x8xf32>
    %87 = tpu.matmul %85, %86, %cst_25 {dimension_numbers = #tpu.dot_dimension_numbers<[2], [1], [1], [2], [0, 0, 0, 1, 1, 2], [0], [0]>} : vector<3x2x2xbf16>, vector<3x2x8xbf16>, vector<3x2x8xf32> -> vector<3x2x8xf32>
    %88 = tpu.concatenate %39, %55, %71, %87 in 2 : vector<3x2x8xf32>, vector<3x2x8xf32>, vector<3x2x8xf32>, vector<3x2x8xf32> -> vector<3x2x32xf32>
    %89 = vector.shape_cast %88 : vector<3x2x32xf32> to vector<6x32xf32>
    %90 = arith.truncf %89 : vector<6x32xf32> to vector<6x32xbf16>
    %c0_26 = arith.constant 0 : index
    %c0_27 = arith.constant 0 : index
    %c0_28 = arith.constant 0 : index
    %91 = vector.load %arg4[%c0_26, %c0_27, %c0_28] : memref<1x32x32xbf16, #tpu.memory_space<vmem>>, vector<1x32x32xbf16>
    %92 = vector.shape_cast %91 : vector<1x32x32xbf16> to vector<32x32xbf16>
    %cst_29 = arith.constant dense<0.000000e+00> : vector<6x32xf32>
    %93 = tpu.matmul %90, %92, %cst_29 {dimension_numbers = #tpu.dot_dimension_numbers<[1], [0], [0], [1], [0, 0, 1, 1], [], []>} : vector<6x32xbf16>, vector<32x32xbf16>, vector<6x32xf32> -> vector<6x32xf32>
    %c0_30 = arith.constant 0 : index
    %c0_31 = arith.constant 0 : index
    %c0_32 = arith.constant 0 : index
    %94 = vector.load %arg5[%c0_30, %c0_31, %c0_32] : memref<1x1x32xf32, #tpu.memory_space<vmem>>, vector<1x1x32xf32>
    %95 = vector.shape_cast %94 : vector<1x1x32xf32> to vector<1x32xf32>
    %96 = vector.broadcast %95 : vector<1x32xf32> to vector<6x32xf32>
    %97 = arith.addf %93, %96 : vector<6x32xf32>
    %98 = arith.addf %4, %97 : vector<6x32xf32>
    %c0_33 = arith.constant 0 : index
    %c0_34 = arith.constant 0 : index
    %c0_35 = arith.constant 0 : index
    %99 = vector.load %arg10[%c0_33, %c0_34, %c0_35] : memref<1x1x32xf32, #tpu.memory_space<vmem>>, vector<1x1x32xf32>
    %100 = vector.shape_cast %99 : vector<1x1x32xf32> to vector<1x32xf32>
    %c0_36 = arith.constant 0 : index
    %c0_37 = arith.constant 0 : index
    %c0_38 = arith.constant 0 : index
    %101 = vector.load %arg11[%c0_36, %c0_37, %c0_38] : memref<1x1x32xf32, #tpu.memory_space<vmem>>, vector<1x1x32xf32>
    %102 = vector.shape_cast %101 : vector<1x1x32xf32> to vector<1x32xf32>
    %cst_39 = arith.constant dense<0.000000e+00> : vector<6xf32>
    %103 = vector.multi_reduction <add>, %98, %cst_39 [1] : vector<6x32xf32> to vector<6xf32>
    %104 = vector.shape_cast %103 : vector<6xf32> to vector<6x1xf32>
    %cst_40 = arith.constant 3.200000e+01 : f32
    %105 = vector.broadcast %cst_40 : f32 to vector<6x1xf32>
    %106 = arith.divf %104, %105 : vector<6x1xf32>
    %107 = vector.broadcast %106 : vector<6x1xf32> to vector<6x32xf32>
    %108 = arith.subf %98, %107 : vector<6x32xf32>
    %109 = arith.mulf %108, %108 : vector<6x32xf32>
    %cst_41 = arith.constant dense<0.000000e+00> : vector<6xf32>
    %110 = vector.multi_reduction <add>, %109, %cst_41 [1] : vector<6x32xf32> to vector<6xf32>
    %111 = vector.shape_cast %110 : vector<6xf32> to vector<6x1xf32>
    %cst_42 = arith.constant 3.200000e+01 : f32
    %112 = vector.broadcast %cst_42 : f32 to vector<6x1xf32>
    %113 = arith.divf %111, %112 : vector<6x1xf32>
    %114 = vector.broadcast %106 : vector<6x1xf32> to vector<6x32xf32>
    %115 = arith.subf %98, %114 : vector<6x32xf32>
    %cst_43 = arith.constant 9.99999974E-6 : f32
    %116 = vector.broadcast %cst_43 : f32 to vector<6x1xf32>
    %117 = arith.addf %113, %116 : vector<6x1xf32>
    %118 = math.rsqrt %117 : vector<6x1xf32>
    %119 = vector.broadcast %118 : vector<6x1xf32> to vector<6x32xf32>
    %120 = arith.mulf %115, %119 : vector<6x32xf32>
    %121 = vector.broadcast %100 : vector<1x32xf32> to vector<6x32xf32>
    %122 = arith.mulf %120, %121 : vector<6x32xf32>
    %123 = vector.broadcast %102 : vector<1x32xf32> to vector<6x32xf32>
    %124 = arith.addf %122, %123 : vector<6x32xf32>
    %125 = arith.truncf %124 : vector<6x32xf32> to vector<6x32xbf16>
    %c0_44 = arith.constant 0 : index
    %c0_45 = arith.constant 0 : index
    %c0_46 = arith.constant 0 : index
    %126 = vector.load %arg6[%c0_44, %c0_45, %c0_46] : memref<1x32x64xbf16, #tpu.memory_space<vmem>>, vector<1x32x64xbf16>
    %127 = vector.shape_cast %126 : vector<1x32x64xbf16> to vector<32x64xbf16>
    %cst_47 = arith.constant dense<0.000000e+00> : vector<6x64xf32>
    %128 = tpu.matmul %125, %127, %cst_47 {dimension_numbers = #tpu.dot_dimension_numbers<[1], [0], [0], [1], [0, 0, 1, 1], [], []>} : vector<6x32xbf16>, vector<32x64xbf16>, vector<6x64xf32> -> vector<6x64xf32>
    %c0_48 = arith.constant 0 : index
    %c0_49 = arith.constant 0 : index
    %c0_50 = arith.constant 0 : index
    %129 = vector.load %arg7[%c0_48, %c0_49, %c0_50] : memref<1x1x64xf32, #tpu.memory_space<vmem>>, vector<1x1x64xf32>
    %130 = vector.shape_cast %129 : vector<1x1x64xf32> to vector<1x64xf32>
    %131 = vector.broadcast %130 : vector<1x64xf32> to vector<6x64xf32>
    %132 = arith.addf %128, %131 : vector<6x64xf32>
    %cst_51 = arith.constant 0.000000e+00 : f32
    %133 = vector.broadcast %cst_51 : f32 to vector<6x64xf32>
    %134 = arith.maximumf %132, %133 : vector<6x64xf32>
    %135 = arith.truncf %134 : vector<6x64xf32> to vector<6x64xbf16>
    %c0_52 = arith.constant 0 : index
    %c0_53 = arith.constant 0 : index
    %c0_54 = arith.constant 0 : index
    %136 = vector.load %arg8[%c0_52, %c0_53, %c0_54] : memref<1x64x32xbf16, #tpu.memory_space<vmem>>, vector<1x64x32xbf16>
    %137 = vector.shape_cast %136 : vector<1x64x32xbf16> to vector<64x32xbf16>
    %cst_55 = arith.constant dense<0.000000e+00> : vector<6x32xf32>
    %138 = tpu.matmul %135, %137, %cst_55 {dimension_numbers = #tpu.dot_dimension_numbers<[1], [0], [0], [1], [0, 0, 1, 1], [], []>} : vector<6x64xbf16>, vector<64x32xbf16>, vector<6x32xf32> -> vector<6x32xf32>
    %c0_56 = arith.constant 0 : index
    %c0_57 = arith.constant 0 : index
    %c0_58 = arith.constant 0 : index
    %139 = vector.load %arg9[%c0_56, %c0_57, %c0_58] : memref<1x1x32xf32, #tpu.memory_space<vmem>>, vector<1x1x32xf32>
    %140 = vector.shape_cast %139 : vector<1x1x32xf32> to vector<1x32xf32>
    %141 = vector.broadcast %140 : vector<1x32xf32> to vector<6x32xf32>
    %142 = arith.addf %138, %141 : vector<6x32xf32>
    %143 = arith.addf %124, %142 : vector<6x32xf32>
    %c0_59 = arith.constant 0 : index
    %c0_60 = arith.constant 0 : index
    %c0_61 = arith.constant 0 : index
    %144 = vector.load %arg12[%c0_59, %c0_60, %c0_61] : memref<1x1x32xf32, #tpu.memory_space<vmem>>, vector<1x1x32xf32>
    %145 = vector.shape_cast %144 : vector<1x1x32xf32> to vector<1x32xf32>
    %c0_62 = arith.constant 0 : index
    %c0_63 = arith.constant 0 : index
    %c0_64 = arith.constant 0 : index
    %146 = vector.load %arg13[%c0_62, %c0_63, %c0_64] : memref<1x1x32xf32, #tpu.memory_space<vmem>>, vector<1x1x32xf32>
    %147 = vector.shape_cast %146 : vector<1x1x32xf32> to vector<1x32xf32>
    %cst_65 = arith.constant dense<0.000000e+00> : vector<6xf32>
    %148 = vector.multi_reduction <add>, %143, %cst_65 [1] : vector<6x32xf32> to vector<6xf32>
    %149 = vector.shape_cast %148 : vector<6xf32> to vector<6x1xf32>
    %cst_66 = arith.constant 3.200000e+01 : f32
    %150 = vector.broadcast %cst_66 : f32 to vector<6x1xf32>
    %151 = arith.divf %149, %150 : vector<6x1xf32>
    %152 = vector.broadcast %151 : vector<6x1xf32> to vector<6x32xf32>
    %153 = arith.subf %143, %152 : vector<6x32xf32>
    %154 = arith.mulf %153, %153 : vector<6x32xf32>
    %cst_67 = arith.constant dense<0.000000e+00> : vector<6xf32>
    %155 = vector.multi_reduction <add>, %154, %cst_67 [1] : vector<6x32xf32> to vector<6xf32>
    %156 = vector.shape_cast %155 : vector<6xf32> to vector<6x1xf32>
    %cst_68 = arith.constant 3.200000e+01 : f32
    %157 = vector.broadcast %cst_68 : f32 to vector<6x1xf32>
    %158 = arith.divf %156, %157 : vector<6x1xf32>
    %159 = vector.broadcast %151 : vector<6x1xf32> to vector<6x32xf32>
    %160 = arith.subf %143, %159 : vector<6x32xf32>
    %cst_69 = arith.constant 9.99999974E-6 : f32
    %161 = vector.broadcast %cst_69 : f32 to vector<6x1xf32>
    %162 = arith.addf %158, %161 : vector<6x1xf32>
    %163 = math.rsqrt %162 : vector<6x1xf32>
    %164 = vector.broadcast %163 : vector<6x1xf32> to vector<6x32xf32>
    %165 = arith.mulf %160, %164 : vector<6x32xf32>
    %166 = vector.broadcast %145 : vector<1x32xf32> to vector<6x32xf32>
    %167 = arith.mulf %165, %166 : vector<6x32xf32>
    %168 = vector.broadcast %147 : vector<1x32xf32> to vector<6x32xf32>
    %169 = arith.addf %167, %168 : vector<6x32xf32>
    %170 = vector.shape_cast %169 : vector<6x32xf32> to vector<3x2x32xf32>
    %c0_70 = arith.constant 0 : index
    %c0_71 = arith.constant 0 : index
    %c0_72 = arith.constant 0 : index
    %171 = vector.load %arg20[%c0_70, %c0_71, %c0_72] : memref<3x2x32xf32, #tpu.memory_space<vmem>>, vector<3x2x32xf32>
    tpu.vector_store %arg20[%c0_70, %c0_71, %c0_72], %170 {strides = array<i32>} : memref<3x2x32xf32, #tpu.memory_space<vmem>>, vector<3x2x32xf32>,
    %c1_i32 = arith.constant 1 : i32
    %172 = arith.cmpi eq, %arg0, %c1_i32 : i32
    %173 = arith.extui %172 : i1 to i32
    %c0_i32_73 = arith.constant 0 : i32
    %174 = arith.cmpi ne, %173, %c0_i32_73 : i32
    scf.if %174 {
      %c0_74 = arith.constant 0 : index
      %c0_75 = arith.constant 0 : index
      %175 = vector.load %arg14[%c0_74, %c0_75] : memref<1x32xf32, #tpu.memory_space<vmem>>, vector<1x32xf32>
      %c0_76 = arith.constant 0 : index
      %c0_77 = arith.constant 0 : index
      %176 = vector.load %arg15[%c0_76, %c0_77] : memref<1x32xf32, #tpu.memory_space<vmem>>, vector<1x32xf32>
      %cst_78 = arith.constant dense<0.000000e+00> : vector<6xf32>
      %177 = vector.multi_reduction <add>, %169, %cst_78 [1] : vector<6x32xf32> to vector<6xf32>
      %178 = vector.shape_cast %177 : vector<6xf32> to vector<6x1xf32>
      %cst_79 = arith.constant 3.200000e+01 : f32
      %179 = vector.broadcast %cst_79 : f32 to vector<6x1xf32>
      %180 = arith.divf %178, %179 : vector<6x1xf32>
      %181 = vector.broadcast %180 : vector<6x1xf32> to vector<6x32xf32>
      %182 = arith.subf %169, %181 : vector<6x32xf32>
      %183 = arith.mulf %182, %182 : vector<6x32xf32>
      %cst_80 = arith.constant dense<0.000000e+00> : vector<6xf32>
      %184 = vector.multi_reduction <add>, %183, %cst_80 [1] : vector<6x32xf32> to vector<6xf32>
      %185 = vector.shape_cast %184 : vector<6xf32> to vector<6x1xf32>
      %cst_81 = arith.constant 3.200000e+01 : f32
      %186 = vector.broadcast %cst_81 : f32 to vector<6x1xf32>
      %187 = arith.divf %185, %186 : vector<6x1xf32>
      %188 = vector.broadcast %180 : vector<6x1xf32> to vector<6x32xf32>
      %189 = arith.subf %169, %188 : vector<6x32xf32>
      %cst_82 = arith.constant 9.99999974E-6 : f32
      %190 = vector.broadcast %cst_82 : f32 to vector<6x1xf32>
      %191 = arith.addf %187, %190 : vector<6x1xf32>
      %192 = math.rsqrt %191 : vector<6x1xf32>
      %193 = vector.broadcast %192 : vector<6x1xf32> to vector<6x32xf32>
      %194 = arith.mulf %189, %193 : vector<6x32xf32>
      %195 = vector.broadcast %175 : vector<1x32xf32> to vector<6x32xf32>
      %196 = arith.mulf %194, %195 : vector<6x32xf32>
      %197 = vector.broadcast %176 : vector<1x32xf32> to vector<6x32xf32>
      %198 = arith.addf %196, %197 : vector<6x32xf32>
      %199 = vector.shape_cast %198 : vector<6x32xf32> to vector<3x2x32xf32>
      %c0_83 = arith.constant 0 : index
      %c0_84 = arith.constant 0 : index
      %c0_85 = arith.constant 0 : index
      %200 = vector.load %arg16[%c0_83, %c0_84, %c0_85] : memref<3x1x32xf32, #tpu.memory_space<vmem>>, vector<3x1x32xf32>
      %201 = vector.broadcast %200 : vector<3x1x32xf32> to vector<3x2x32xf32>
      %202 = arith.mulf %199, %201 : vector<3x2x32xf32>
      %cst_86 = arith.constant dense<0.000000e+00> : vector<2x32xf32>
      %203 = vector.multi_reduction <add>, %202, %cst_86 [0] : vector<3x2x32xf32> to vector<2x32xf32>
      %c0_87 = arith.constant 0 : index
      %c0_88 = arith.constant 0 : index
      %204 = vector.load %arg17[%c0_87, %c0_88] : memref<1x32xf32, #tpu.memory_space<vmem>>, vector<1x32xf32>
      %205 = vector.broadcast %204 : vector<1x32xf32> to vector<2x32xf32>
      %206 = arith.mulf %203, %205 : vector<2x32xf32>
      %cst_89 = arith.constant dense<0.000000e+00> : vector<2xf32>
      %207 = vector.multi_reduction <add>, %206, %cst_89 [1] : vector<2x32xf32> to vector<2xf32>
      %208 = vector.shape_cast %207 : vector<2xf32> to vector<2x1xf32>
      %c0_90 = arith.constant 0 : index
      %c0_91 = arith.constant 0 : index
      %209 = vector.load %arg18[%c0_90, %c0_91] : memref<1x1xf32, #tpu.memory_space<vmem>>, vector<1x1xf32>
      %210 = vector.broadcast %209 : vector<1x1xf32> to vector<2x1xf32>
      %211 = arith.addf %208, %210 : vector<2x1xf32>
      %cst_92 = arith.constant 0.000000e+00 : f32
      %212 = vector.broadcast %cst_92 : f32 to vector<2x1xf32>
      %213 = arith.subf %212, %211 : vector<2x1xf32>
      %214 = math.exp %213 : vector<2x1xf32>
      %cst_93 = arith.constant 1.000000e+00 : f32
      %215 = vector.broadcast %cst_93 : f32 to vector<2x1xf32>
      %216 = arith.addf %215, %214 : vector<2x1xf32>
      %cst_94 = arith.constant 1.000000e+00 : f32
      %217 = vector.broadcast %cst_94 : f32 to vector<2x1xf32>
      %218 = arith.divf %217, %216 : vector<2x1xf32>
      %c0_95 = arith.constant 0 : index
      %c0_96 = arith.constant 0 : index
      %219 = vector.load %arg19[%c0_95, %c0_96] : memref<2x1xf32, #tpu.memory_space<vmem>>, vector<2x1xf32>
      tpu.vector_store %arg19[%c0_95, %c0_96], %218 {strides = array<i32>} : memref<2x1xf32, #tpu.memory_space<vmem>>, vector<2x1xf32>,
    } else {
    }
    return
  }
  func.func @transform_0(%arg0: i32) -> (i32, i32, i32) {
    %c0_i32 = arith.constant 0 : i32
    %c0_i32_0 = arith.constant 0 : i32
    %c0_i32_1 = arith.constant 0 : i32
    %c0_i32_2 = arith.constant 0 : i32
    return %c0_i32, %c0_i32_0, %c0_i32_1 : i32, i32, i32
  }
  func.func @transform_1(%arg0: i32) -> (i32, i32, i32) {
    %c0_i32 = arith.constant 0 : i32
    %c0_i32_0 = arith.constant 0 : i32
    %c0_i32_1 = arith.constant 0 : i32
    return %arg0, %c0_i32, %c0_i32_0 : i32, i32, i32
  }
  func.func @transform_2(%arg0: i32) -> (i32, i32, i32) {
    %c0_i32 = arith.constant 0 : i32
    %c0_i32_0 = arith.constant 0 : i32
    %c0_i32_1 = arith.constant 0 : i32
    return %arg0, %c0_i32, %c0_i32_0 : i32, i32, i32
  }
  func.func @transform_3(%arg0: i32) -> (i32, i32, i32) {
    %c0_i32 = arith.constant 0 : i32
    %c0_i32_0 = arith.constant 0 : i32
    %c0_i32_1 = arith.constant 0 : i32
    return %arg0, %c0_i32, %c0_i32_0 : i32, i32, i32
  }
  func.func @transform_4(%arg0: i32) -> (i32, i32, i32) {
    %c0_i32 = arith.constant 0 : i32
    %c0_i32_0 = arith.constant 0 : i32
    %c0_i32_1 = arith.constant 0 : i32
    return %arg0, %c0_i32, %c0_i32_0 : i32, i32, i32
  }
  func.func @transform_5(%arg0: i32) -> (i32, i32, i32) {
    %c0_i32 = arith.constant 0 : i32
    %c0_i32_0 = arith.constant 0 : i32
    %c0_i32_1 = arith.constant 0 : i32
    return %arg0, %c0_i32, %c0_i32_0 : i32, i32, i32
  }
  func.func @transform_6(%arg0: i32) -> (i32, i32, i32) {
    %c0_i32 = arith.constant 0 : i32
    %c0_i32_0 = arith.constant 0 : i32
    %c0_i32_1 = arith.constant 0 : i32
    return %arg0, %c0_i32, %c0_i32_0 : i32, i32, i32
  }
  func.func @transform_7(%arg0: i32) -> (i32, i32, i32) {
    %c0_i32 = arith.constant 0 : i32
    %c0_i32_0 = arith.constant 0 : i32
    %c0_i32_1 = arith.constant 0 : i32
    return %arg0, %c0_i32, %c0_i32_0 : i32, i32, i32
  }
  func.func @transform_8(%arg0: i32) -> (i32, i32, i32) {
    %c0_i32 = arith.constant 0 : i32
    %c0_i32_0 = arith.constant 0 : i32
    %c0_i32_1 = arith.constant 0 : i32
    return %arg0, %c0_i32, %c0_i32_0 : i32, i32, i32
  }
  func.func @transform_9(%arg0: i32) -> (i32, i32, i32) {
    %c0_i32 = arith.constant 0 : i32
    %c0_i32_0 = arith.constant 0 : i32
    %c0_i32_1 = arith.constant 0 : i32
    return %arg0, %c0_i32, %c0_i32_0 : i32, i32, i32
  }
  func.func @transform_10(%arg0: i32) -> (i32, i32, i32) {
    %c0_i32 = arith.constant 0 : i32
    %c0_i32_0 = arith.constant 0 : i32
    %c0_i32_1 = arith.constant 0 : i32
    return %arg0, %c0_i32, %c0_i32_0 : i32, i32, i32
  }
  func.func @transform_11(%arg0: i32) -> (i32, i32, i32) {
    %c0_i32 = arith.constant 0 : i32
    %c0_i32_0 = arith.constant 0 : i32
    %c0_i32_1 = arith.constant 0 : i32
    return %arg0, %c0_i32, %c0_i32_0 : i32, i32, i32
  }
  func.func @transform_12(%arg0: i32) -> (i32, i32, i32) {
    %c0_i32 = arith.constant 0 : i32
    %c0_i32_0 = arith.constant 0 : i32
    %c0_i32_1 = arith.constant 0 : i32
    return %arg0, %c0_i32, %c0_i32_0 : i32, i32, i32
  }
  func.func @transform_13(%arg0: i32) -> (i32, i32) {
    %c0_i32 = arith.constant 0 : i32
    %c0_i32_0 = arith.constant 0 : i32
    %c0_i32_1 = arith.constant 0 : i32
    return %c0_i32, %c0_i32_0 : i32, i32
  }
  func.func @transform_14(%arg0: i32) -> (i32, i32) {
    %c0_i32 = arith.constant 0 : i32
    %c0_i32_0 = arith.constant 0 : i32
    %c0_i32_1 = arith.constant 0 : i32
    return %c0_i32, %c0_i32_0 : i32, i32
  }
  func.func @transform_15(%arg0: i32) -> (i32, i32, i32) {
    %c0_i32 = arith.constant 0 : i32
    %c0_i32_0 = arith.constant 0 : i32
    %c0_i32_1 = arith.constant 0 : i32
    %c0_i32_2 = arith.constant 0 : i32
    return %c0_i32, %c0_i32_0, %c0_i32_1 : i32, i32, i32
  }
  func.func @transform_16(%arg0: i32) -> (i32, i32) {
    %c0_i32 = arith.constant 0 : i32
    %c0_i32_0 = arith.constant 0 : i32
    %c0_i32_1 = arith.constant 0 : i32
    return %c0_i32, %c0_i32_0 : i32, i32
  }
  func.func @transform_17(%arg0: i32) -> (i32, i32) {
    %c0_i32 = arith.constant 0 : i32
    %c0_i32_0 = arith.constant 0 : i32
    %c0_i32_1 = arith.constant 0 : i32
    return %c0_i32, %c0_i32_0 : i32, i32
  }
  func.func @transform_18(%arg0: i32) -> (i32, i32) {
    %c0_i32 = arith.constant 0 : i32
    %c0_i32_0 = arith.constant 0 : i32
    %c0_i32_1 = arith.constant 0 : i32
    return %c0_i32, %c0_i32_0 : i32, i32
  }
}

</mosaic_0001>

<bundles_post_ra>
// kernel: orpheus3_forward.2
= control target key start
LH: loop header
LB: loop body
LE: loop exit
PB: predicated region body
PF: predicated region fallthrough
CT: control target
= control target key end

     0   :  { %vm84_vm0 = vcmask 1045504   ;;  %vm71_vm1 = vcmask 97280   ;;  %vm158_vm2 = vcmask 1041408   ;;  %vm201_vm3 = vcmask 130048   ;;  %s996_s29 = smov 32   ;;  %s1201_s1 = inlined_call_operand.vmem [shape: bf16[12,16], index: 1, kind: input, shape index: {}]   ;;  %s1202_s0 = inlined_call_operand.vmem [shape: bf16[60,12], index: 0, kind: input, shape index: {}]   ;;  %s1203_s2 = inlined_call_operand.vmem [shape: f32[1,16], index: 2, kind: input, shape index: {}]   ;;  %s1204_s3 = inlined_call_operand.vmem [shape: f32[1,16], index: 3, kind: input, shape index: {}]   ;;  %s1205_s4 = inlined_call_operand.vmem [shape: f32[1,16], index: 4, kind: input, shape index: {}]   ;;  %s1206_s5 = inlined_call_operand.vmem [shape: bf16[48,32], index: 5, kind: input, shape index: {}]   ;;  %s1207_s6 = inlined_call_operand.vmem [shape: f32[1,32], index: 6, kind: input, shape index: {}]   ;;  %s1208_s7 = inlined_call_operand.vmem [shape: f32[1,32], index: 7, kind: input, shape index: {}]   ;;  %s1209_s8 = inlined_call_operand.vmem [shape: f32[1,32], index: 8, kind: input, shape index: {}]   ;;  %s1210_s9 = inlined_call_operand.vmem [shape: f32[3,1,32], index: 9, kind: input, shape index: {}]   ;;  %s1211_s10 = inlined_call_operand.vmem [shape: f32[3,2,32], index: 10, kind: output, shape index: {}]  }
   0x1   :  { %v974_v0 = vld [vmem:[%s1201_s1] sm:$0x3f]   ;;  %v976_v3 = vld [vmem:[%s1202_s0 + $0x8] sm:$0xff]   ;;  %v977_v4 = vld [vmem:[%s1202_s0 + $0x10] sm:$0xff]   ;;  %vm211_vm8 = vcmask 128000   ;;  %vm995_vm9 = vmmov 0  }
   0x2   :  { %v975_v1 = vld [vmem:[%s1202_s0] sm:$0xff]   ;;  %942 = vmatprep.subr.msk.bf16.mxu0 %vm84_vm0, %v974_v0  ;;  %v86_v2 = vsel %vm84_vm0, %v974_v0, 0  ;;  %v978_v5 = vld [vmem:[%s1202_s0 + $0x18] sm:$0x3f]   ;;  %vm503_vm10 = vcmask 261120   ;;  %vm713_vm11 = vcmask 1043456  }
   0x3   :  { %923 = vmatpush3.bf16.msra.mxu0 %v86_v2  ;;  %924 = vmatprep.mubr.msk.bf16.mxu0 %vm71_vm1, %v975_v1  ;;  %v897_v18 = vld [vmem:[%s1203_s2] ss:$0 sm:$0xff]  ;;  %vm742_vm12 = vcmask 392192   ;;  %vm807_vm14 = vcmask 259072   ;;  %vm880_vm15 = vcmask 254976  }
   0x6   :  { %925 = vmatmul.mubr.msk.bf16.vlgmr.msra.gmra.mxu0 %vm71_vm1, %v976_v3 }
   0x7   :  { %928 = vmatprep.mubr.msk.bf16.mxu0 %vm71_vm1, %v977_v4 }
   0xe   :  { %929 = vmatmul.mubr.msk.bf16.gmra.mxu0 %vm71_vm1, %v978_v5 }
  0xc6   :  { %v926_v6 = vpop.f32.mrf.mxu0 }
  0xc8   :  { %v122_v7 = vpop.f32.mrf.mxu0 }
  0xca   :  { %v927_v8 = vpop.f32.mrf.mxu0 }
  0xcb   :  { %v159_v12 = vrot.slane %v927_v8, 6 }
  0xcc   :  { %v125_v9 = vpop.f32.mrf.mxu0 }
  0xce   :  { %v930_v10 = vpop.f32.mrf.mxu0 }
  0xcf   :  { %v164_v15 = vrot.slane %v930_v10, 6 }
  0xd0   :  { %v138_v11 = vpop.f32.mrf.mxu0 }
  0xd1   :  { %v160_v13 = vrot.slane %v138_v11, 6 }
  0xd2   :  { %v931_v14 = vpop.f32.mrf.mxu0 }
  0xd3   :  { %v161_v16 = vsel %vm158_vm2, %v159_v12, %v160_v13  ;;  %v166_v17 = vrot.slane %v931_v14, 6  ;;  %v992_v12 = vmov 1966171168   ;;  %v284_v14 = vlaneseq }
  0xd4   :  { %v172_v19 = vmax.f32 %v122_v7, %v161_v16  ;;  %v141_v20 = vpop.f32.mrf.mxu0 }
  0xd5   :  { %v167_v21 = vsel %vm158_vm2, %v164_v15, %v166_v17  ;;  %v162_v22 = vrot.slane %v141_v20, 6  ;;  %v1085_v16 = vshrl.u32 %v284_v14, 7  ;;  %v899_v20 = vld [vmem:[%s1205_s4] ss:$0 sm:$0xff] }
  0xd6   :  { %v175_v23 = vmax.f32 %v927_v8, %v167_v21  ;;  %v183_v24 = vadd.f32 %v897_v18, %v172_v19 }
  0xd7   :  { %v163_v25 = vsel %vm158_vm2, %v160_v13, %v162_v22  ;;  %v165_v26 = vsel %vm158_vm2, %v162_v22, %v164_v15  ;;  %v282_v13 = vunpack.c.l.s4 %v992_v12 }
  0xd8   :  { %v173_v27 = vmax.f32 %v125_v9, %v163_v25  ;;  %v174_v28 = vmax.f32 %v926_v6, %v165_v26  ;;  %vm187_vm4 = vcmp.ge.f32.partialorder %v183_v24, 0.0  ;;  %v191_v29 = vmul.f32 0.01, %v183_v24 }
  0xd9   :  { %v186_v30 = vadd.f32 %v897_v18, %v175_v23  ;;  %v283_v15 = vunpack.c.0.s8 %v282_v13 }
  0xda   :  { %v195_v31 = vsel %vm187_vm4, %v183_v24, %v191_v29  ;;  %v185_v32 = vadd.f32 %v897_v18, %v174_v28  ;;  %v184_v33 = vadd.f32 %v897_v18, %v173_v27  ;;  %v898_v18 = vld [vmem:[%s1204_s3] ss:$0 sm:$0xff]  ;;  %s993_s3 = smov 16  }
  0xdb   :  { %v202_v34 = vsel %vm201_vm3, %v195_v31, 0.0  ;;  %v194_v35 = vmul.f32 0.01, %v186_v30  ;;  %vm190_vm7 = vcmp.ge.f32.partialorder %v186_v30, 0.0  ;;  %v1094_v22 = vsub.s32 %v283_v15, %v1085_v16 }
  0xdc   :  { %203 = vadd.xlane.f32.xlu0 %v202_v34  ;;  %vm189_vm5 = vcmp.ge.f32.partialorder %v185_v32, 0.0  ;;  %v193_v36 = vmul.f32 0.01, %v185_v32  ;;  %vm188_vm6 = vcmp.ge.f32.partialorder %v184_v33, 0.0  ;;  %v192_v37 = vmul.f32 0.01, %v184_v33 }
  0xdd   :  { %v198_v42 = vsel %vm190_vm7, %v186_v30, %v194_v35 }
  0xde   :  { %v197_v38 = vsel %vm189_vm5, %v185_v32, %v193_v36  ;;  %v196_v39 = vsel %vm188_vm6, %v184_v33, %v192_v37  ;;  %v212_v43 = vsel %vm211_vm8, %v198_v42, 0.0 }
  0xdf   :  { %v208_v40 = vsel %vm201_vm3, %v197_v38, 0.0  ;;  %v205_v41 = vsel %vm201_vm3, %v196_v39, 0.0 }
  0xe0   :  { %209 = vadd.xlane.f32.xlu0 %v208_v40  ;;  %206 = vadd.xlane.f32.xlu1 %v205_v41 }
  0xe4   :  { %213 = vadd.xlane.f32.xlu1 %v212_v43 }
 0x165   :  { %v204_v44 = vpop.xlane.xlu0 %203 }
 0x166   :  { %v216_v45 = vmul.f32 0.0625, %v204_v44 }
 0x168   :  { %v220_v46 = vsub.f32 %v195_v31, %v216_v45 }
 0x169   :  { %v210_v47 = vpop.xlane.xlu0 %209  ;;  %v207_v48 = vpop.xlane.xlu1 %206 }
 0x16a   :  { %v218_v49 = vmul.f32 0.0625, %v210_v47  ;;  %v217_v50 = vmul.f32 0.0625, %v207_v48  ;;  %v224_v51 = vmul.f32 %v220_v46, %v220_v46 }
 0x16c   :  { %v222_v52 = vsub.f32 %v197_v38, %v218_v49  ;;  %v221_v53 = vsub.f32 %v196_v39, %v217_v50  ;;  %v228_v54 = vsel %vm201_vm3, %v224_v51, 0.0 }
 0x16d   :  { %229 = vadd.xlane.f32.xlu0 %v228_v54  ;;  %v214_v55 = vpop.xlane.xlu1 %213 }
 0x16e   :  { %v219_v56 = vmul.f32 0.0625, %v214_v55  ;;  %v226_v57 = vmul.f32 %v222_v52, %v222_v52  ;;  %v225_v58 = vmul.f32 %v221_v53, %v221_v53 }
 0x170   :  { %v223_v59 = vsub.f32 %v198_v42, %v219_v56  ;;  %v234_v60 = vsel %vm201_vm3, %v226_v57, 0.0  ;;  %v231_v61 = vsel %vm201_vm3, %v225_v58, 0.0 }
 0x171   :  { %235 = vadd.xlane.f32.xlu1 %v234_v60  ;;  %232 = vadd.xlane.f32.xlu0 %v231_v61 }
 0x172   :  { %v227_v62 = vmul.f32 %v223_v59, %v223_v59 }
 0x174   :  { %v237_v63 = vsel %vm211_vm8, %v227_v62, 0.0 }
 0x175   :  { %238 = vadd.xlane.f32.xlu1 %v237_v63 }
 0x1f6   :  { %v230_v0 = vpop.xlane.xlu0 %229 }
 0x1f7   :  { %v240_v1 = vmul.f32 0.0625, %v230_v0 }
 0x1f9   :  { %v244_v2 = vadd.f32 1e-05, %v240_v1 }
 0x1fa   :  { %v233_v3 = vpop.xlane.xlu0 %232  ;;  %v236_v4 = vpop.xlane.xlu1 %235 }
 0x1fb   :  { %982 = vrsqrt.f32 %v244_v2  ;;  %v241_v5 = vmul.f32 0.0625, %v233_v3  ;;  %v242_v6 = vmul.f32 0.0625, %v236_v4 }
 0x1fd   :  { %v245_v7 = vadd.f32 1e-05, %v241_v5  ;;  %v246_v8 = vadd.f32 1e-05, %v242_v6 }
 0x1fe   :  { %v239_v9 = vpop.xlane.xlu1 %238 }
 0x1ff   :  { %984 = vrsqrt.f32 %v245_v7  ;;  %v243_v10 = vmul.f32 0.0625, %v239_v9 }
 0x200   :  { %986 = vrsqrt.f32 %v246_v8 }
 0x201   :  { %v247_v11 = vadd.f32 1e-05, %v243_v10 }
 0x203   :  { %988 = vrsqrt.f32 %v247_v11 }
 0x208   :  { %v983_v17 = vpop.eup %982 }
 0x209   :  { %v252_v19 = vmul.f32 %v983_v17, %v220_v46 }
 0x20b   :  { %v262_v21 = vmul.f32 %v898_v18, %v252_v19 }
 0x20c   :  { %v985_v23 = vpop.eup %984 }
 0x20d   :  { %v987_v24 = vpop.eup %986  ;;  %v253_v25 = vmul.f32 %v985_v23, %v221_v53  ;;  %v272_v26 = vadd.f32 %v899_v20, %v262_v21 }
 0x20e   :  { %v254_v27 = vmul.f32 %v987_v24, %v222_v52 }
 0x20f   :  { %v263_v28 = vmul.f32 %v898_v18, %v253_v25  ;;  %v287_v29 = vrot.slane %v272_v26, %v1094_v22  ;;  %v280_v30 = vcombine.high %v272_v26, %v272_v26 }
 0x210   :  { %v989_v31 = vpop.eup %988  ;;  %v264_v32 = vmul.f32 %v898_v18, %v254_v27 }
 0x211   :  { %v255_v33 = vmul.f32 %v989_v31, %v223_v59  ;;  %v295_v34 = vcombine.high %v287_v29, %v287_v29  ;;  %v273_v35 = vadd.f32 %v899_v20, %v263_v28  ;;  %v294_v36 = vrot.slane %v280_v30, %v1094_v22 }
 0x212   :  { %v274_v37 = vadd.f32 %v899_v20, %v264_v32  ;;  %v1099_v38 = vrot.slane %v287_v29, %v1094_v22 }
 0x213   :  { %v265_v39 = vmul.f32 %v898_v18, %v255_v33  ;;  %v296_v40 = vcombine.high %v294_v36, %v294_v36  ;;  %v336_v41 = vrot.slane %v273_v35, %v1094_v22  ;;  %v317_v42 = vrot.slane %v295_v34, %v1094_v22 }
 0x214   :  { %v384_v43 = vrot.slane %v274_v37, %v1094_v22  ;;  %v377_v44 = vcombine.high %v274_v37, %v274_v37  ;;  %v310_v45 = vrot.slane %v294_v36, %v1094_v22  ;;  %v325_v49 = vcombine.high %v1099_v38, %v1099_v38 }
 0x215   :  { %v275_v46 = vadd.f32 %v899_v20, %v265_v39  ;;  %v324_v47 = vrot.slane %v296_v40, %v1094_v22  ;;  %v344_v48 = vcombine.high %v336_v41, %v336_v41  ;;  %v352_v53 = vrot.slane %v336_v41, %v1094_v22  ;;  %v979_v40 = vld [vmem:[%s1206_s5 + $0x10] sm:$0xff]  }
 0x216   :  { %v400_v50 = vrot.slane %v384_v43, %v1094_v22  ;;  %v391_v51 = vrot.slane %v377_v44, %v1094_v22  ;;  %v392_v52 = vcombine.high %v384_v43, %v384_v43  ;;  %v326_v56 = vcombine.high %v310_v45, %v310_v45 }
 0x217   :  { %v366_v54 = vrot.slane %v344_v48, %v1094_v22  ;;  %v432_v55 = vrot.slane %v275_v46, %v1094_v22  ;;  %v329_v57 = vcombine.high %v273_v35, %v273_v35  ;;  %v374_v18 = vcombine.high %v352_v53, %v352_v53 }
 0x218   :  { %v466_v58 = vcombine.low %v317_v42, %v400_v50  ;;  %v900_v59 = vcombine.high %v317_v42, %v400_v50  ;;  %v407_v60 = vrot.slane %v391_v51, %v1094_v22  ;;  %v414_v61 = vrot.slane %v392_v52, %v1094_v22 }
 0x219   :  { %v440_v62 = vrot.slane %v432_v55, %v1094_v22  ;;  %v393_v63 = vcombine.high %v391_v51, %v391_v51  ;;  %v433_v0 = vcombine.high %v432_v55, %v432_v55  ;;  %v343_v1 = vrot.slane %v329_v57, %v1094_v22 }
 0x21a   :  { %v473_v2 = vrot.slane %v466_v58, %v1094_v22  ;;  %v621_v3 = vrot.slane %v900_v59, %v1094_v22  ;;  %v901_v4 = vcombine.high %v324_v47, %v407_v60  ;;  %v521_v5 = vcombine.low %v324_v47, %v407_v60  ;;  %v981_v58 = vld [vmem:[%s1206_s5] sm:$0xff]  }
 0x21b   :  { %v902_v6 = vcombine.high %v366_v54, %v440_v62  ;;  %v575_v7 = vcombine.low %v366_v54, %v440_v62  ;;  %v424_v8 = vcombine.high %v414_v61, %v414_v61  ;;  %v484_v9 = vcombine.low %v325_v49, %v414_v61 }
 0x21c   :  { %v480_v10 = vrot.slane %v473_v2, %v1094_v22  ;;  %v628_v11 = vrot.slane %v621_v3, %v1094_v22  ;;  %v645_v12 = vrot.slane %v901_v4, %v1094_v22  ;;  %v528_v13 = vrot.slane %v521_v5, %v1094_v22 }
 0x21d   :  { %v669_v14 = vrot.slane %v902_v6, %v1094_v22  ;;  %v582_v15 = vrot.slane %v575_v7, %v1094_v22  ;;  %v505_v17 = vcombine.low %v310_v45, %v424_v8  ;;  %v491_v21 = vrot.slane %v484_v9, %v1094_v22 }
 0x21e   :  { %v949_v19 = vpack.i.bf16 %v628_v11, %v480_v10  ;;  %v652_v20 = vrot.slane %v645_v12, %v1094_v22  ;;  %v421_v23 = vrot.slane %v393_v63, %v1094_v22  ;;  %v535_v25 = vrot.slane %v528_v13, %v1094_v22 }
 0x21f   :  { %v676_v24 = vrot.slane %v669_v14, %v1094_v22  ;;  %v589_v26 = vrot.slane %v582_v15, %v1094_v22  ;;  %v512_v27 = vrot.slane %v505_v17, %v1094_v22  ;;  %v447_v28 = vrot.slane %v433_v0, %v1094_v22 }
 0x220   :  { %950 = vrot.lane.b32.xlu1 %v949_v19, %s993_s3  ;;  %v539_v29 = vcombine.low %v326_v56, %v421_v23  ;;  %v425_v30 = vcombine.high %v421_v23, %v421_v23  ;;  %v345_v31 = vcombine.high %v343_v1, %v343_v1  ;;  %v498_v41 = vrot.slane %v491_v21, %v1094_v22 }
 0x221   :  { %v959_v32 = vpack.i.bf16 %v652_v20, %v676_v24  ;;  %v954_v33 = vpack.i.bf16 %v589_v26, %v535_v25  ;;  %v519_v34 = vrot.slane %v512_v27, %v1094_v22  ;;  %v593_v36 = vcombine.low %v374_v18, %v447_v28 }
 0x222   :  { %v546_v35 = vrot.slane %v539_v29, %v1094_v22  ;;  %v559_v37 = vcombine.low %v352_v53, %v425_v30  ;;  %v373_v39 = vrot.slane %v345_v31, %v1094_v22  ;;  %v359_v42 = vrot.slane %v343_v1, %v1094_v22  ;;  %v980_v53 = vld [vmem:[%s1206_s5 + $0x8] sm:$0xff]  }
 0x223   :  { %955 = vrot.lane.b32.xlu0 %v954_v33, %s993_s3  ;;  %v449_v43 = vcombine.high %v447_v28, %v447_v28  ;;  %v600_v44 = vrot.slane %v593_v36, %v1094_v22  ;;  %v969_v46 = vpack.i.bf16 %v519_v34, %v498_v41  ;;  %v994_v49 = vmov 0.0  }
 0x224   :  { %960 = vrot.lane.b32.xlu1 %v959_v32, %s993_s3  ;;  %v376_v45 = vcombine.high %v373_v39, %v373_v39  ;;  %v566_v47 = vrot.slane %v559_v37, %v1094_v22  ;;  %932 = vmatprep.subr.bf16.mxu1 %v994_v49  ;;  %v553_v50 = vrot.slane %v546_v35, %v1094_v22 }
 0x225   :  { %v680_v48 = vcombine.low %v359_v42, %v449_v43  ;;  %v607_v51 = vrot.slane %v600_v44, %v1094_v22  ;;  %933 = vmatpush3.bf16.msra.mxu1 %v979_v40  ;;  %938 = vmatprep.mubr.msk.bf16.mxu1 %vm995_vm9, %v994_v49  ;;  %v907_v43 = vld [vmem:[%s1207_s6] ss:$0 sm:$0xff] }
 0x226   :  { %v450_v52 = vcombine.low %v1099_v38, %v376_v45  ;;  %934 = vmatprep.subr.bf16.mxu1 %v994_v49  ;;  %v573_v57 = vrot.slane %v566_v47, %v1094_v22 }
 0x227   :  { %970 = vrot.lane.b32.xlu0 %v969_v46, %s996_s29  ;;  %v964_v54 = vpack.i.bf16 %v607_v51, %v553_v50  ;;  %v687_v55 = vrot.slane %v680_v48, %v1094_v22 }
 0x228   :  { %v457_v56 = vrot.slane %v450_v52, %v1094_v22 }
 0x229   :  { %965 = vrot.lane.b32.xlu1 %v964_v54, %s996_s29  ;;  %935 = vmatpush3.bf16.msra.mxu1 %v980_v53  ;;  %v694_v59 = vrot.slane %v687_v55, %v1094_v22 }
 0x22a   :  { %v464_v38 = vrot.slane %v457_v56, %v1094_v22  ;;  %936 = vmatprep.subr.bf16.mxu1 %v994_v49 }
 0x22b   :  { %656 = vrot.lane.b32.xlu0 %v573_v57, %s996_s29 }
 0x22d   :  { %695 = vrot.lane.b32.xlu1 %v694_v59, %s996_s29  ;;  %937 = vmatpush3.bf16.msra.mxu1 %v981_v58 }
 0x292   :  { %v951_v60 = vpop.permute.xlu1 %950 }
 0x293   :  { %v953_v0 = vunpack.i.h.bf16 %v951_v60  ;;  %v952_v4 = vunpack.i.l.bf16 %v951_v60  ;;  %v908_v60 = vld [vmem:[%s1208_s7] ss:$0 sm:$0xff] }
 0x295   :  { %v956_v61 = vpop.permute.xlu0 %955  ;;  %v635_v10 = vsel %vm201_vm3, %v498_v41, %v953_v0  ;;  %v502_v17 = vsel %vm201_vm3, %v464_v38, %v952_v4 }
 0x296   :  { %v961_v62 = vpop.permute.xlu1 %960  ;;  %v958_v1 = vunpack.i.h.bf16 %v956_v61  ;;  %v957_v2 = vunpack.i.l.bf16 %v956_v61 }
 0x297   :  { %v962_v5 = vunpack.i.l.bf16 %v961_v62  ;;  %v963_v12 = vunpack.i.h.bf16 %v961_v62  ;;  %v909_v62 = vld [vmem:[%s1209_s8] ss:$0 sm:$0xff] }
 0x298   :  { %v611_v22 = vsel %vm201_vm3, %v573_v57, %v958_v1  ;;  %v557_v11 = vsel %vm201_vm3, %v519_v34, %v957_v2  ;;  %v997_v57 = vmov 1983009808   ;;  %v910_v2 = vld [vmem:[%s1210_s9] ss:$0 sm:$0xff] }
 0x299   :  { %v971_v63 = vpop.permute.xlu0 %970  ;;  %v698_v23 = vsel %vm201_vm3, %v607_v51, %v962_v5  ;;  %v659_v28 = vsel %vm201_vm3, %v553_v50, %v963_v12  ;;  %v839_v38 = vunpack.c.l.s4 %v997_v57  ;;  %v911_v5 = vld [vmem:[%s1210_s9 + $0x1] ss:$0 sm:$0xff] }
 0x29a   :  { %v973_v3 = vunpack.i.h.bf16 %v971_v63  ;;  %v972_v7 = vunpack.i.l.bf16 %v971_v63 }
 0x29b   :  { %v966_v6 = vpop.permute.xlu1 %965  ;;  %v840_v58 = vunpack.c.0.s8 %v839_v38 }
 0x29c   :  { %v968_v8 = vunpack.i.h.bf16 %v966_v6  ;;  %v967_v9 = vunpack.i.l.bf16 %v966_v6  ;;  %v636_v13 = vsel %vm503_vm10, %v635_v10, %v973_v3  ;;  %v504_v24 = vsel %vm503_vm10, %v502_v17, %v972_v7  ;;  %v912_v6 = vld [vmem:[%s1210_s9 + $0x2] ss:$0 sm:$0xff] }
 0x29d   :  { %v657_v20 = vpop.permute.xlu0 %656  ;;  %v707_v26 = vrot.slane %v636_v13, 2  ;;  %v843_v63 = vsub.s32 %v840_v58, %v1085_v16 }
 0x29e   :  { %v612_v14 = vsel %vm503_vm10, %v611_v22, %v968_v8  ;;  %v558_v15 = vsel %vm503_vm10, %v557_v11, %v967_v9  ;;  %v660_v30 = vsel %vm503_vm10, %v659_v28, %v657_v20 }
 0x29f   :  { %v704_v18 = vrot.slane %v612_v14, 4  ;;  %v701_v19 = vrot.slane %v558_v15, 6  ;;  %v696_v21 = vpop.permute.xlu1 %695 }
 0x2a0   :  { %v699_v25 = vsel %vm503_vm10, %v698_v23, %v696_v21 }
 0x2a1   :  { %v712_v27 = vsel %vm158_vm2, %v504_v24, %v701_v19  ;;  %v710_v29 = vrot.slane %v699_v25, 6 }
 0x2a2   :  { %v714_v31 = vsel %vm713_vm11, %v712_v27, %v704_v18 }
 0x2a3   :  { %v716_v32 = vsel %vm158_vm2, %v660_v30, %v710_v29  ;;  %v715_v33 = vsel %vm84_vm0, %v714_v31, %v707_v26 }
 0x2a4   :  { %v717_v34 = vpack.c.bf16 %v716_v32, %v715_v33 }
 0x2a6   :  { %939 = vmatmul.mubr.msk.bf16.vlgmr.msra.gmra.mxu1 %vm742_vm12, %v717_v34 }
 0x366   :  { %v780_v35 = vpop.f32.mrf.mxu1 }
 0x367   :  { %v789_v39 = vrot.slane %v780_v35, 6 }
 0x368   :  { %v940_v36 = vpop.f32.mrf.mxu1 }
 0x36a   :  { %v783_v37 = vpop.f32.mrf.mxu1 }
 0x36b   :  { %v790_v40 = vrot.slane %v783_v37, 6 }
 0x36c   :  { %v941_v41 = vpop.f32.mrf.mxu1 }
 0x36d   :  { %v791_v42 = vsel %vm158_vm2, %v789_v39, %v790_v40 }
 0x36e   :  { %v793_v44 = vmax.f32 %v780_v35, %v791_v42 }
 0x370   :  { %v801_v45 = vadd.f32 %v907_v43, %v793_v44 }
 0x372   :  { %vm802_vm13 = vcmp.ge.f32.partialorder %v801_v45, 0.0  ;;  %v803_v46 = vmul.f32 0.01, %v801_v45 }
 0x374   :  { %v804_v47 = vsel %vm802_vm13, %v801_v45, %v803_v46 }
 0x375   :  { %v808_v48 = vsel %vm807_vm14, %v804_v47, 0.0 }
 0x376   :  { %809 = vadd.xlane.f32.xlu1 %v808_v48 }
 0x3ff   :  { %v810_v49 = vpop.xlane.xlu1 %809 }
 0x400   :  { %v812_v50 = vmul.f32 0.03125, %v810_v49 }
 0x402   :  { %v813_v51 = vsub.f32 %v804_v47, %v812_v50 }
 0x404   :  { %v814_v52 = vmul.f32 %v813_v51, %v813_v51 }
 0x406   :  { %v815_v53 = vsel %vm807_vm14, %v814_v52, 0.0 }
 0x407   :  { %816 = vadd.xlane.f32.xlu0 %v815_v53 }
 0x490   :  { %v817_v54 = vpop.xlane.xlu0 %816 }
 0x491   :  { %v818_v55 = vmul.f32 0.03125, %v817_v54 }
 0x493   :  { %v819_v56 = vadd.f32 1e-05, %v818_v55 }
 0x495   :  { %990 = vrsqrt.f32 %v819_v56 }
 0x4a2   :  { %v991_v59 = vpop.eup %990 }
 0x4a3   :  { %v821_v61 = vmul.f32 %v991_v59, %v813_v51 }
 0x4a5   :  { %v828_v0 = vmul.f32 %v908_v60, %v821_v61 }
 0x4a7   :  { %v835_v1 = vadd.f32 %v909_v62, %v828_v0 }
 0x4a9   :  { %v837_v3 = vcombine.high %v835_v1, %v835_v1  ;;  %v844_v4 = vrot.slane %v835_v1, %v843_v63 }
 0x4ab   :  { %v851_v7 = vrot.slane %v837_v3, %v843_v63  ;;  %v852_v8 = vcombine.high %v844_v4, %v844_v4  ;;  %v877_v16 = vadd.f32 %v910_v2, %v844_v4 }
 0x4ad   :  { %v878_v9 = vadd.f32 %v911_v5, %v852_v8  ;;  %v879_v10 = vadd.f32 %v912_v6, %v851_v7  ;;  %881 = vst.msk [vmem:[%s1211_s10] sm:$0x3] %vm880_vm15, %v877_v16 }
 0x4af   :  { %882 = vst.msk [vmem:[%s1211_s10 + $0x2] sm:$0x3] %vm880_vm15, %v878_v9  ;;  %883 = vst.msk [vmem:[%s1211_s10 + $0x4] sm:$0x3] %vm880_vm15, %v879_v10 }

// kernel: orpheus3_forward.3
= control target key start
LH: loop header
LB: loop body
LE: loop exit
PB: predicated region body
PF: predicated region fallthrough
CT: control target
= control target key end

     0   :  { %s3799_s29 = smov 0   ;;  %s4276_s0 = inlined_call_operand.vmem [shape: f32[3,2,32], index: 0, kind: input, shape index: {}]   ;;  %s4277_s1 = inlined_call_operand.vmem [shape: bf16[2,32,96], index: 1, kind: input, shape index: {}]   ;;  %s4278_s2 = inlined_call_operand.vmem [shape: f32[2,1,96], index: 2, kind: input, shape index: {}]   ;;  %s4279_s3 = inlined_call_operand.vmem [shape: bf16[2,32,32], index: 3, kind: input, shape index: {}]   ;;  %s4280_s4 = inlined_call_operand.vmem [shape: f32[2,1,32], index: 4, kind: input, shape index: {}]   ;;  %s4281_s5 = inlined_call_operand.vmem [shape: bf16[2,32,64], index: 5, kind: input, shape index: {}]   ;;  %s4282_s6 = inlined_call_operand.vmem [shape: f32[2,1,64], index: 6, kind: input, shape index: {}]   ;;  %s4283_s7 = inlined_call_operand.vmem [shape: bf16[2,64,32], index: 7, kind: input, shape index: {}]   ;;  %s4284_s8 = inlined_call_operand.vmem [shape: f32[2,1,32], index: 8, kind: input, shape index: {}]   ;;  %s4285_s9 = inlined_call_operand.vmem [shape: f32[2,1,32], index: 9, kind: input, shape index: {}]   ;;  %s4286_s10 = inlined_call_operand.vmem [shape: f32[2,1,32], index: 10, kind: input, shape index: {}]   ;;  %s4287_s11 = inlined_call_operand.vmem [shape: f32[2,1,32], index: 11, kind: input, shape index: {}]   ;;  %s4288_s12 = inlined_call_operand.vmem [shape: f32[2,1,32], index: 12, kind: input, shape index: {}]   ;;  %s4289_s13 = inlined_call_operand.vmem [shape: f32[1,32], index: 13, kind: input, shape index: {}]   ;;  %s4290_s14 = inlined_call_operand.vmem [shape: f32[1,32], index: 14, kind: input, shape index: {}]   ;;  %s4291_s15 = inlined_call_operand.vmem [shape: f32[3,1,32], index: 15, kind: input, shape index: {}]   ;;  %s4292_s16 = inlined_call_operand.vmem [shape: f32[1,32], index: 16, kind: input, shape index: {}]   ;;  %s4293_s17 = inlined_call_operand.<no memory space> [shape: f32[1,1], index: 17, kind: input, shape index: {}]   ;;  %s4294_s18 = inlined_call_operand.vmem [shape: f32[2,1], index: 18, kind: output, shape index: {}]  }
   0x1   :  { %4298 = sst [smem:[#allocation5_spill]] %s4276_s0  ;;  %v23_v0 = vstv %s4293_s17 }
   0x2   :  { %4299 = sst [smem:[#allocation6_spill]] %s4277_s1  ;;  %24 = vst [vmem:[#allocation3] sm:$0x1] %v23_v0 }
   0x3   :  { %4300 = sst [smem:[#allocation7_spill]] %s4278_s2 }
   0x4   :  { %4301 = sst [smem:[#allocation8_spill]] %s4279_s3 }
   0x5   :  { %4302 = sst [smem:[#allocation9_spill]] %s4281_s5 }
   0x6   :  { %4303 = sst [smem:[#allocation10_spill]] %s4290_s14 }
   0x7   :  { %4304 = sst [smem:[#allocation11_spill]] %s4291_s15 }
   0x8   :  { %4305 = sst [smem:[#allocation12_spill]] %s4292_s16 }
   0x9   :  { %4306 = sst [smem:[#allocation13_spill]] %s4294_s18 }
   0xa LB: > { %4307 = sst [smem:[#allocation4_spill]] %s3679_s29  ;;  %s3805_s30 = sadd.s32 4294967295, %s3679_s29   ;;  %s3679_s29 = sphi %s3799_s29, %s30_s29  }
   0xb   : > { %p3261_p0 = scmp.ge.s32.totalorder %s3679_s29, 1  ;;  %p603_p1 = scmp.lt.s32.totalorder %s3679_s29, 3 }
   0xd   : > { %p604_p2 = pnand %p3261_p0, %p603_p1 }
   0xe   : > { %p691_p3 = scmp.lt.s32.totalorder (!%p604_p2), %s3805_s30, 1  ;;  %s4309_s23 = sld [smem:[#allocation6_spill]] (!%p604_p2) }
   0xf   : > { %607 = sbr.rel (%p604_p2) target bundleno = 4632 (0x1218), region = 92  ;;  %s4310_s3 = sld [smem:[#allocation8_spill]] (!%p604_p2) }
  0x10   : > { %s4311_s5 = sld [smem:[#allocation9_spill]] (!%p604_p2)  ;;  %p3270_p4 = scmp.ne.s32.totalorder (!%p604_p2), %s3805_s30, 0 }
  0x14   : > { %s3811_s17 = scalar_select %p691_p3, %s3805_s30, 1 }
  0x15   : > { %s4312_s26 = sld [smem:[#allocation5_spill]] (!%p3270_p4) }
  0x16   : > { %s3327_s0 = sshll.u32 %s3811_s17, 4  ;;  %s3330_s22 = sshll.u32 %s3811_s17, 5 }
  0x17   : > { %s695_s24 = scalar_lea.vmem %s4309_s23, %s3327_s0  ;;  %s3824_s27 = scalar_lea.vmem %s4310_s3, %s3327_s0 }
  0x18   : > { %s3833_s14 = scalar_lea.vmem %s4311_s5, %s3327_s0  ;;  %s3843_s25 = scalar_lea.vmem %s4283_s7, %s3330_s22 }
  0x19   : > { %s722_s29 = scalar_lea.vmem %s4284_s8, %s3811_s17  ;;  %s725_s15 = scalar_lea.vmem %s4285_s9, %s3811_s17 }
  0x1a   : > { %s728_s3 = scalar_lea.vmem %s4286_s10, %s3811_s17  ;;  %s731_s20 = scalar_lea.vmem %s4287_s11, %s3811_s17 }
  0x1b   : > { %s734_s22 = scalar_lea.vmem %s4288_s12, %s3811_s17  ;;  %739 = sbr.rel (%p3270_p4) target bundleno = 35 (0x23), region = 96 }
  0x20   : > { %v740_v1 = vld [vmem:[%s4312_s26] sm:$0x3]  ;;  %vm743_vm0 = vcmask 254976   ;;  %v741_v2 = vld [vmem:[%s4312_s26 + $0x2] sm:$0x3] }
  0x21   : > { %744 = vst.msk [vmem:[#allocation2] sm:$0x3] %vm743_vm0, %v740_v1  ;;  %745 = vst.msk [vmem:[#allocation2 + $0x2] sm:$0x3] %vm743_vm0, %v741_v2  ;;  %v742_v3 = vld [vmem:[%s4312_s26 + $0x4] sm:$0x3] }
  0x22   : > { %746 = vst.msk [vmem:[#allocation2 + $0x4] sm:$0x3] %vm743_vm0, %v742_v3 }
  0x23 PF: > { %v3601_v4 = vld [vmem:[%s695_s24 + $0x8] sm:$0xff]   ;;  %v757_v5 = vlaneseq  ;;  %v3681_v6 = vmov 0.0   ;;  %v3602_v7 = vld [vmem:[%s695_s24] sm:$0xff]   ;;  %vm3682_vm1 = vmmov 0   ;;  %v3683_v11 = vmov 1983009808  }
  0x24   : > { %3393 = vmatprep.subr.bf16.mxu0 %v3681_v6  ;;  %3401 = vmatprep.subr.bf16.mxu1 %v3681_v6  ;;  %v755_v12 = vunpack.c.l.s4 %v3683_v11  ;;  %vm794_vm2 = vcmask 261120   ;;  %s4313_s19 = sld [smem:[#allocation7_spill]]  ;;  %s3684_s2 = smov 96   ;;  %vm888_vm3 = vcmask 64512   ;;  %vm1033_vm4 = vcmask 9216  }
  0x25   : > { %3394 = vmatpush3.bf16.msra.mxu0 %v3601_v4  ;;  %3397 = vmatprep.mubr.msk.bf16.mxu0 %vm3682_vm1, %v3681_v6  ;;  %v3880_v10 = vshrl.u32 %v757_v5, 7  ;;  %s3685_s21 = smov 64   ;;  %s3686_s23 = smov 88   ;;  %vm1076_vm5 = vcmask 1040384   ;;  %vm1072_vm6 = vcmask 15360   ;;  %vm2248_vm7 = vcmask 130048  }
  0x26   : > { %3395 = vmatprep.subr.bf16.mxu0 %v3681_v6  ;;  %3403 = vmatprep.mubr.msk.bf16.mxu1 %vm3682_vm1, %v3681_v6  ;;  %v756_v15 = vunpack.c.0.s8 %v755_v12  ;;  %s3687_s18 = smov 120   ;;  %s3688_s28 = smov 56   ;;  %vm2252_vm8 = vcmask 195584   ;;  %vm2388_vm9 = vcmask 259072   ;;  %vm2661_vm10 = vcmask 523264  }
  0x27   : > { %s3689_s16 = smov 80   ;;  %s3690_s0 = smov 112   ;;  %vm2893_vm11 = vcmask 254976  }
  0x28   : > { %v747_v8 = vld [vmem:[#allocation2] sm:$0x3]  ;;  %v748_v9 = vld [vmem:[#allocation2 + $0x2] sm:$0x3]  ;;  %v3886_v16 = vsub.s32 %v756_v15, %v3880_v10  ;;  %s3691_s5 = smov 48   ;;  %s3692_s24 = smov 72  }
  0x29   : > { %v3672_v13 = vld.sshfl [vmem:[#allocation2 + $0x4] sm:$0x3 pattern:$0x76325410]  ;;  %3396 = vmatpush3.bf16.msra.mxu0 %v3602_v7  ;;  %v753_v14 = vcombine.low %v747_v8, %v748_v9  ;;  %p3317_p5 = scmp.ne.s32.totalorder %s3805_s30, 1 }
  0x2a   : > { %3407 = vmatprep.subr.bf16.mxu0 %v3681_v6  ;;  %s4314_s1 = scalar_lea.vmem %s4313_s19, %s3811_s17  ;;  %s3693_s19 = smov 104  }
  0x2b   : > { %v760_v17 = vrot.slane %v753_v14, %v3886_v16  ;;  %v3271_v20 = vld [vmem:[%s4314_s1] ss:$0 sm:$0xff]  ;;  %s3694_s1 = smov 40  }
  0x2d   : > { %v768_v18 = vcombine.low %v760_v17, %v3672_v13 }
  0x2f   : > { %v770_v19 = vpack.c.bf16 %v768_v18, %v768_v18 }
  0x31   : > { %3398 = vmatmul.mubr.msk.bf16.vlgmr.msra.gmra.mxu0 %vm794_vm2, %v770_v19 }
  0x32   : > { %3409 = vmatprep.mubr.msk.bf16.mxu0 %vm3682_vm1, %v3681_v6 }
  0xf1   : > { %v832_v21 = vpop.f32.mrf.mxu0 }
  0xf2   : > { %v833_v22 = vadd.f32 %v3271_v20, %v832_v21 }
  0xf3   : > { %v3399_v23 = vpop.f32.mrf.mxu0 }
  0xf4   : > { %v863_v24 = vcombine.high %v833_v22, %v833_v22  ;;  %v870_v25 = vrot.slane %v833_v22, %v3886_v16  ;;  %v838_v33 = vmul.f32 0.35355338, %v833_v22 }
  0xf5   : > { %v835_v26 = vpop.f32.mrf.mxu0 }
  0xf6   : > { %v877_v27 = vrot.slane %v863_v24, %v3886_v16  ;;  %v878_v28 = vcombine.high %v870_v25, %v870_v25  ;;  %v3899_v29 = vpack.c.bf16 %v870_v25, %v870_v25  ;;  %v847_v36 = vrot.slane %v838_v33, %v3886_v16 }
  0xf7   : > { %v3400_v30 = vpop.f32.mrf.mxu0  ;;  %v840_v40 = vcombine.high %v838_v33, %v838_v33 }
  0xf8   : > { %v3901_v31 = vpack.c.bf16 %v877_v27, %v877_v27  ;;  %886 = vrot.lane.b32.xlu0 %v3899_v29, %s3684_s2  ;;  %v3905_v32 = vpack.c.bf16 %v878_v28, %v878_v28  ;;  %v855_v41 = vcombine.high %v847_v36, %v847_v36  ;;  %v3912_v42 = vpack.c.bf16 %v847_v36, %v847_v36 }
  0xf9   : > { %v854_v44 = vrot.slane %v840_v40, %v3886_v16 }
  0xfa   : > { %985 = vrot.lane.b32.xlu1 %v3901_v31, %s3684_s2  ;;  %v3921_v45 = vpack.c.bf16 %v855_v41, %v855_v41 }
  0xfb   : > { %v3928_v46 = vpack.c.bf16 %v854_v44, %v854_v44 }
  0xfc   : > { %936 = vrot.lane.b32.xlu0 %v3905_v32, %s3684_s2  ;;  %s3695_s2 = smov 8  }
 0x16a   : > { %v887_v34 = vpop.permute.xlu0 %886 }
 0x16b   : > { %v893_v35 = vsel %vm888_vm3, %v887_v34, 0 }
 0x16c   : > { %3402 = vmatpush3.bf16.xpose.msra.mxu1 %v893_v35  ;;  %v986_v39 = vpop.permute.xlu1 %985 }
 0x16d   : > { %3413 = vmatprep.subr.bf16.mxu1 %v3681_v6  ;;  %v991_v43 = vsel %vm888_vm3, %v986_v39, 0 }
 0x16e   : > { %v937_v37 = vpop.permute.xlu0 %936 }
 0x16f   : > { %v942_v38 = vsel %vm888_vm3, %v937_v37, 0 }
 0x170   : > { %3408 = vmatpush3.bf16.xpose.msra.mxu0 %v942_v38 }
 0x171   : > { %3419 = vmatprep.subr.bf16.mxu0 %v3681_v6 }
 0x173   : > { %3404 = vmatmul.mubr.msk.bf16.vlgmr.msra.gmra.mxu1 %vm888_vm3, %v3912_v42 }
 0x174   : > { %3414 = vmatpush3.bf16.xpose.msra.mxu1 %v991_v43  ;;  %3415 = vmatprep.mubr.msk.bf16.mxu1 %vm3682_vm1, %v3681_v6 }
 0x175   : > { %3425 = vmatprep.subr.bf16.mxu1 %v3681_v6 }
 0x177   : > { %3410 = vmatmul.mubr.msk.bf16.vlgmr.msra.gmra.mxu0 %vm888_vm3, %v3921_v45 }
 0x178   : > { %3421 = vmatprep.mubr.msk.bf16.mxu0 %vm3682_vm1, %v3681_v6 }
 0x17b   : > { %3416 = vmatmul.mubr.msk.bf16.vlgmr.msra.gmra.mxu1 %vm888_vm3, %v3928_v46 }
 0x17c   : > { %3427 = vmatprep.mubr.msk.bf16.mxu1 %vm3682_vm1, %v3681_v6 }
 0x233   : > { %v929_v47 = vpop.f32.mrf.mxu1 }
 0x234   : > { %v1034_v48 = vsel %vm1033_vm4, %v929_v47, -inf }
 0x235   : > { %1035 = vmax.xlane.f32.xlu1 %v1034_v48  ;;  %v3405_v49 = vpop.f32.mrf.mxu1 }
 0x237   : > { %v932_v50 = vpop.f32.mrf.mxu1  ;;  %v978_v51 = vpop.f32.mrf.mxu0 }
 0x238   : > { %v1037_v52 = vsel %vm1033_vm4, %v978_v51, -inf }
 0x239   : > { %v3406_v53 = vpop.f32.mrf.mxu1  ;;  %1038 = vmax.xlane.f32.xlu0 %v1037_v52  ;;  %v3411_v54 = vpop.f32.mrf.mxu0 }
 0x23b   : > { %v981_v55 = vpop.f32.mrf.mxu0  ;;  %v1027_v56 = vpop.f32.mrf.mxu1 }
 0x23c   : > { %v1040_v57 = vsel %vm1033_vm4, %v1027_v56, -inf }
 0x23d   : > { %v3417_v58 = vpop.f32.mrf.mxu1  ;;  %1041 = vmax.xlane.f32.xlu0 %v1040_v57  ;;  %v3412_v59 = vpop.f32.mrf.mxu0 }
 0x23f   : > { %v1030_v60 = vpop.f32.mrf.mxu1 }
 0x241   : > { %v3418_v61 = vpop.f32.mrf.mxu1 }
 0x2be   : > { %v1036_v62 = vpop.xlane.xlu1 %1035 }
 0x2bf   : > { %v1043_v63 = vsub.f32 %v929_v47, %v1036_v62 }
 0x2c1   : > { %v1046_v0 = vmul.f32 1.442695, %v1043_v63 }
 0x2c2   : > { %v1039_v1 = vpop.xlane.xlu0 %1038 }
 0x2c3   : > { %3611 = vpow2.f32 %v1046_v0  ;;  %v1044_v2 = vsub.f32 %v978_v51, %v1039_v1 }
 0x2c5   : > { %v1048_v3 = vmul.f32 1.442695, %v1044_v2 }
 0x2c6   : > { %v1042_v9 = vpop.xlane.xlu0 %1041 }
 0x2c7   : > { %3613 = vpow2.f32 %v1048_v3  ;;  %v1045_v11 = vsub.f32 %v1027_v56, %v1042_v9 }
 0x2c9   : > { %v1050_v12 = vmul.f32 1.442695, %v1045_v11 }
 0x2cb   : > { %3615 = vpow2.f32 %v1050_v12 }
 0x2d0   : > { %v3612_v4 = vpop.eup %3611 }
 0x2d1   : > { %v1052_v5 = vsel %vm1033_vm4, %v3612_v4, 0.0 }
 0x2d2   : > { %1053 = vadd.xlane.f32.xlu1 %v1052_v5 }
 0x2d4   : > { %v3614_v7 = vpop.eup %3613 }
 0x2d5   : > { %v1055_v8 = vsel %vm1033_vm4, %v3614_v7, 0.0 }
 0x2d6   : > { %1056 = vadd.xlane.f32.xlu0 %v1055_v8 }
 0x2d8   : > { %v3616_v13 = vpop.eup %3615 }
 0x2d9   : > { %v1058_v14 = vsel %vm1033_vm4, %v3616_v13, 0.0 }
 0x2e3   : > { %1120 = vrot.lane.b32.xlu1 %v3905_v32, %s3685_s21 }
 0x2e7   : > { %1219 = vrot.lane.b32.xlu1 %v3899_v29, %s3686_s23 }
 0x2eb   : > { %1270 = vrot.lane.b32.xlu1 %v3905_v32, %s3686_s23 }
 0x2ec   : > { %1070 = vrot.lane.b32.xlu0 %v3899_v29, %s3685_s21 }
 0x2f0   : > { %1168 = vrot.lane.b32.xlu0 %v3901_v31, %s3685_s21  ;;  %s3696_s21 = smov 16  }
 0x2f4   : > { %1217 = vrot.lane.b32.xlu0 %v3912_v42, %s3687_s18 }
 0x2f8   : > { %1268 = vrot.lane.b32.xlu0 %v3921_v45, %s3687_s18 }
 0x30f   : > { %1059 = vadd.xlane.f32.xlu1 %v1058_v14 }
 0x320   : > { %1321 = vrot.lane.b32.xlu1 %v3901_v31, %s3686_s23  ;;  %s3697_s23 = smov 24  }
 0x324   : > { %1319 = vrot.lane.b32.xlu1 %v3928_v46, %s3687_s18 }
 0x35b   : > { %v1054_v15 = vpop.xlane.xlu1 %1053 }
 0x35c   : > { %3617 = vrcp.f32 %v1054_v15 }
 0x35f   : > { %v1121_v17 = vpop.permute.xlu1 %1120  ;;  %v1057_v18 = vpop.xlane.xlu0 %1056 }
 0x360   : > { %v1126_v19 = vsel %vm1076_vm5, %v1121_v17, 0  ;;  %3619 = vrcp.f32 %v1057_v18 }
 0x361   : > { %3426 = vmatpush3.bf16.msra.mxu1 %v1126_v19 }
 0x362   : > { %3437 = vmatprep.subr.bf16.mxu1 %v3681_v6 }
 0x363   : > { %v1071_v20 = vpop.permute.xlu0 %1070  ;;  %v1220_v30 = vpop.permute.xlu1 %1219 }
 0x364   : > { %v1078_v21 = vsel %vm1076_vm5, %v1071_v20, 0  ;;  %v1225_v34 = vsel %vm888_vm3, %v1220_v30, 0 }
 0x365   : > { %3420 = vmatpush3.bf16.msra.mxu0 %v1078_v21 }
 0x366   : > { %3431 = vmatprep.subr.bf16.mxu0 %v3681_v6 }
 0x367   : > { %v1169_v24 = vpop.permute.xlu0 %1168  ;;  %v1271_v36 = vpop.permute.xlu1 %1270 }
 0x368   : > { %v1174_v27 = vsel %vm1076_vm5, %v1169_v24, 0  ;;  %v1276_v47 = vsel %vm888_vm3, %v1271_v36, 0 }
 0x369   : > { %v3618_v22 = vpop.eup %3617 }
 0x36a   : > { %v1064_v23 = vmul.f32 %v3618_v22, %v3612_v4 }
 0x36b   : > { %v1218_v35 = vpop.permute.xlu0 %1217 }
 0x36c   : > { %v1067_v25 = vpack.c.bf16 %v1064_v23, %v1064_v23 }
 0x36d   : > { %v3620_v26 = vpop.eup %3619 }
 0x36e   : > { %3422 = vmatmul.mubr.msk.bf16.vlgmr.msra.gmra.mxu0 %vm1072_vm6, %v1067_v25  ;;  %v1065_v28 = vmul.f32 %v3620_v26, %v3614_v7 }
 0x36f   : > { %3432 = vmatpush3.bf16.msra.mxu0 %v1174_v27  ;;  %3433 = vmatprep.mubr.msk.bf16.mxu0 %vm3682_vm1, %v3681_v6  ;;  %v1269_v48 = vpop.permute.xlu0 %1268 }
 0x370   : > { %v1068_v33 = vpack.c.bf16 %v1065_v28, %v1065_v28  ;;  %3443 = vmatprep.subr.bf16.mxu0 %v3681_v6 }
 0x372   : > { %3428 = vmatmul.mubr.msk.bf16.vlgmr.msra.gmra.mxu1 %vm1072_vm6, %v1068_v33 }
 0x373   : > { %3438 = vmatpush3.bf16.xpose.msra.mxu1 %v1225_v34  ;;  %3439 = vmatprep.mubr.msk.bf16.mxu1 %vm3682_vm1, %v3681_v6 }
 0x374   : > { %3449 = vmatprep.subr.bf16.mxu1 %v3681_v6 }
 0x37a   : > { %3440 = vmatmul.mubr.msk.bf16.vlgmr.msra.gmra.mxu1 %vm888_vm3, %v1218_v35 }
 0x37b   : > { %3451 = vmatprep.mubr.msk.bf16.mxu1 %vm3682_vm1, %v3681_v6 }
 0x398   : > { %v1060_v37 = vpop.xlane.xlu1 %1059 }
 0x399   : > { %3621 = vrcp.f32 %v1060_v37 }
 0x39c   : > { %v1322_v38 = vpop.permute.xlu1 %1321 }
 0x39d   : > { %v1327_v39 = vsel %vm888_vm3, %v1322_v38, 0 }
 0x39e   : > { %3450 = vmatpush3.bf16.xpose.msra.mxu1 %v1327_v39 }
 0x39f   : > { %3461 = vmatprep.subr.bf16.mxu1 %v3681_v6 }
 0x3a0   : > { %v1320_v40 = vpop.permute.xlu1 %1319 }
 0x3a5   : > { %3452 = vmatmul.mubr.msk.bf16.vlgmr.msra.gmra.mxu1 %vm888_vm3, %v1320_v40 }
 0x3a6   : > { %v3622_v41 = vpop.eup %3621  ;;  %3463 = vmatprep.mubr.msk.bf16.mxu1 %vm3682_vm1, %v3681_v6 }
 0x3a7   : > { %v1066_v43 = vmul.f32 %v3622_v41, %v3616_v13 }
 0x3a9   : > { %v1069_v44 = vpack.c.bf16 %v1066_v43, %v1066_v43 }
 0x3ab   : > { %3434 = vmatmul.mubr.msk.bf16.vlgmr.msra.gmra.mxu0 %vm1072_vm6, %v1069_v44 }
 0x3ac   : > { %3444 = vmatpush3.bf16.xpose.msra.mxu0 %v1276_v47  ;;  %3445 = vmatprep.mubr.msk.bf16.mxu0 %vm3682_vm1, %v3681_v6 }
 0x3ad   : > { %3455 = vmatprep.subr.bf16.mxu0 %v3681_v6 }
 0x3b3   : > { %3446 = vmatmul.mubr.msk.bf16.vlgmr.msra.gmra.mxu0 %vm888_vm3, %v1269_v48 }
 0x3b4   : > { %3457 = vmatprep.mubr.msk.bf16.mxu0 %vm3682_vm1, %v3681_v6 }
 0x42e   : > { %v3979_v49 = vpop.f32.mrf.mxu0 }
 0x430   : > { %v3423_v50 = vpop.f32.mrf.mxu0 }
 0x432   : > { %v1117_v51 = vpop.f32.mrf.mxu0  ;;  %v3981_v52 = vpop.f32.mrf.mxu1 }
 0x434   : > { %v3424_v53 = vpop.f32.mrf.mxu0  ;;  %v3429_v54 = vpop.f32.mrf.mxu1 }
 0x436   : > { %v1165_v55 = vpop.f32.mrf.mxu1 }
 0x438   : > { %v3430_v56 = vpop.f32.mrf.mxu1 }
 0x43a   : > { %v1261_v57 = vpop.f32.mrf.mxu1 }
 0x43b   : > { %v1369_v58 = vsel %vm1033_vm4, %v1261_v57, -inf }
 0x43c   : > { %1370 = vmax.xlane.f32.xlu0 %v1369_v58  ;;  %v3441_v59 = vpop.f32.mrf.mxu1 }
 0x43e   : > { %v1264_v60 = vpop.f32.mrf.mxu1 }
 0x440   : > { %v3442_v61 = vpop.f32.mrf.mxu1 }
 0x465   : > { %v1363_v62 = vpop.f32.mrf.mxu1 }
 0x466   : > { %v1375_v63 = vsel %vm1033_vm4, %v1363_v62, -inf }
 0x467   : > { %1376 = vmax.xlane.f32.xlu0 %v1375_v63  ;;  %v3453_v0 = vpop.f32.mrf.mxu1 }
 0x469   : > { %v1366_v1 = vpop.f32.mrf.mxu1 }
 0x46b   : > { %v3985_v2 = vpop.f32.mrf.mxu0  ;;  %v3454_v3 = vpop.f32.mrf.mxu1 }
 0x46d   : > { %v3435_v4 = vpop.f32.mrf.mxu0 }
 0x46f   : > { %v1213_v5 = vpop.f32.mrf.mxu0 }
 0x471   : > { %v3436_v7 = vpop.f32.mrf.mxu0 }
 0x473   : > { %v1312_v8 = vpop.f32.mrf.mxu0 }
 0x474   : > { %v1372_v9 = vsel %vm1033_vm4, %v1312_v8, -inf }
 0x475   : > { %1373 = vmax.xlane.f32.xlu1 %v1372_v9  ;;  %v3447_v11 = vpop.f32.mrf.mxu0 }
 0x477   : > { %v1315_v12 = vpop.f32.mrf.mxu0 }
 0x479   : > { %v3448_v13 = vpop.f32.mrf.mxu0 }
 0x486   : > { %1405 = vrot.lane.b32.xlu1 %v3899_v29, %s3688_s28 }
 0x48a   : > { %1501 = vrot.lane.b32.xlu1 %v3901_v31, %s3688_s28 }
 0x48e   : > { %1551 = vrot.lane.b32.xlu1 %v3899_v29, %s3689_s16 }
 0x4c5   : > { %v1371_v14 = vpop.xlane.xlu0 %1370 }
 0x4c6   : > { %v1378_v15 = vsub.f32 %v1261_v57, %v1371_v14 }
 0x4c8   : > { %v1381_v17 = vmul.f32 1.442695, %v1378_v15 }
 0x4ca   : > { %3623 = vpow2.f32 %v1381_v17 }
 0x4d7   : > { %v3624_v18 = vpop.eup %3623 }
 0x4d8   : > { %v1387_v19 = vsel %vm1033_vm4, %v3624_v18, 0.0 }
 0x4d9   : > { %1388 = vadd.xlane.f32.xlu0 %v1387_v19 }
 0x4ef   : > { %1453 = vrot.lane.b32.xlu0 %v3905_v32, %s3688_s28  ;;  %s4315_s28 = scalar_lea.vmem %s4280_s4, %s3811_s17 }
 0x4f0   : > { %v1377_v20 = vpop.xlane.xlu0 %1376 }
 0x4f1   : > { %v1380_v21 = vsub.f32 %v1363_v62, %v1377_v20 }
 0x4f3   : > { %v1385_v22 = vmul.f32 1.442695, %v1380_v21 }
 0x4f5   : > { %3625 = vpow2.f32 %v1385_v22 }
 0x4fe   : > { %v1374_v23 = vpop.xlane.xlu1 %1373 }
 0x4ff   : > { %v1379_v24 = vsub.f32 %v1312_v8, %v1374_v23 }
 0x501   : > { %v1383_v25 = vmul.f32 1.442695, %v1379_v24 }
 0x502   : > { %v1406_v26 = vpop.permute.xlu1 %1405  ;;  %v3626_v28 = vpop.eup %3625 }
 0x503   : > { %3627 = vpow2.f32 %v1383_v25  ;;  %v1411_v27 = vsel %vm1076_vm5, %v1406_v26, 0  ;;  %v1393_v30 = vsel %vm1033_vm4, %v3626_v28, 0.0 }
 0x504   : > { %3456 = vmatpush3.bf16.msra.mxu0 %v1411_v27 }
 0x505   : > { %3467 = vmatprep.subr.bf16.mxu0 %v3681_v6 }
 0x506   : > { %v1502_v40 = vpop.permute.xlu1 %1501 }
 0x507   : > { %v1507_v43 = vsel %vm1076_vm5, %v1502_v40, 0 }
 0x50a   : > { %v1552_v44 = vpop.permute.xlu1 %1551 }
 0x50b   : > { %v1557_v60 = vsel %vm888_vm3, %v1552_v44, 0 }
 0x50e   : > { %1394 = vadd.xlane.f32.xlu0 %v1393_v30 }
 0x510   : > { %v3628_v33 = vpop.eup %3627 }
 0x511   : > { %v1390_v34 = vsel %vm1033_vm4, %v3628_v33, 0.0 }
 0x512   : > { %1391 = vadd.xlane.f32.xlu1 %v1390_v34 }
 0x523   : > { %1549 = vrot.lane.b32.xlu1 %v3912_v42, %s3690_s0 }
 0x524   : > { %1601 = vrot.lane.b32.xlu0 %v3905_v32, %s3689_s16 }
 0x527   : > { %1599 = vrot.lane.b32.xlu1 %v3921_v45, %s3690_s0 }
 0x528   : > { %1651 = vrot.lane.b32.xlu0 %v3901_v31, %s3689_s16 }
 0x52c   : > { %1649 = vrot.lane.b32.xlu0 %v3928_v46, %s3690_s0 }
 0x562   : > { %v1389_v35 = vpop.xlane.xlu0 %1388 }
 0x563   : > { %3629 = vrcp.f32 %v1389_v35 }
 0x566   : > { %v1454_v36 = vpop.permute.xlu0 %1453 }
 0x567   : > { %v1459_v37 = vsel %vm1076_vm5, %v1454_v36, 0 }
 0x568   : > { %3462 = vmatpush3.bf16.msra.mxu1 %v1459_v37 }
 0x569   : > { %3473 = vmatprep.subr.bf16.mxu1 %v3681_v6 }
 0x570   : > { %v3630_v38 = vpop.eup %3629 }
 0x571   : > { %v1399_v39 = vmul.f32 %v3630_v38, %v3624_v18 }
 0x573   : > { %v1402_v41 = vpack.c.bf16 %v1399_v39, %v1399_v39 }
 0x575   : > { %3458 = vmatmul.mubr.msk.bf16.vlgmr.msra.gmra.mxu0 %vm1072_vm6, %v1402_v41 }
 0x576   : > { %3468 = vmatpush3.bf16.msra.mxu0 %v1507_v43  ;;  %3469 = vmatprep.mubr.msk.bf16.mxu0 %vm3682_vm1, %v3681_v6 }
 0x577   : > { %3479 = vmatprep.subr.bf16.mxu0 %v3681_v6 }
 0x597   : > { %v1395_v47 = vpop.xlane.xlu0 %1394 }
 0x598   : > { %3631 = vrcp.f32 %v1395_v47 }
 0x59b   : > { %v1392_v48 = vpop.xlane.xlu1 %1391  ;;  %v1602_v53 = vpop.permute.xlu0 %1601 }
 0x59c   : > { %3633 = vrcp.f32 %v1392_v48  ;;  %v1607_v56 = vsel %vm888_vm3, %v1602_v53, 0 }
 0x59f   : > { %v1550_v58 = vpop.permute.xlu1 %1549  ;;  %v1652_v62 = vpop.permute.xlu0 %1651 }
 0x5a0   : > { %v1657_v63 = vsel %vm888_vm3, %v1652_v62, 0 }
 0x5a3   : > { %v1600_v61 = vpop.permute.xlu1 %1599  ;;  %v1650_v0 = vpop.permute.xlu0 %1649 }
 0x5a5   : > { %v3632_v50 = vpop.eup %3631 }
 0x5a6   : > { %v1401_v51 = vmul.f32 %v3632_v50, %v3626_v28 }
 0x5a8   : > { %v1404_v54 = vpack.c.bf16 %v1401_v51, %v1401_v51 }
 0x5a9   : > { %v3634_v55 = vpop.eup %3633 }
 0x5aa   : > { %3470 = vmatmul.mubr.msk.bf16.vlgmr.msra.gmra.mxu0 %vm1072_vm6, %v1404_v54  ;;  %v1400_v57 = vmul.f32 %v3634_v55, %v3628_v33 }
 0x5ab   : > { %3480 = vmatpush3.bf16.xpose.msra.mxu0 %v1607_v56  ;;  %3481 = vmatprep.mubr.msk.bf16.mxu0 %vm3682_vm1, %v3681_v6 }
 0x5ac   : > { %v1403_v59 = vpack.c.bf16 %v1400_v57, %v1400_v57  ;;  %3491 = vmatprep.subr.bf16.mxu0 %v3681_v6 }
 0x5ae   : > { %3464 = vmatmul.mubr.msk.bf16.vlgmr.msra.gmra.mxu1 %vm1072_vm6, %v1403_v59 }
 0x5af   : > { %3474 = vmatpush3.bf16.xpose.msra.mxu1 %v1557_v60  ;;  %3475 = vmatprep.mubr.msk.bf16.mxu1 %vm3682_vm1, %v3681_v6 }
 0x5b0   : > { %3485 = vmatprep.subr.bf16.mxu1 %v3681_v6 }
 0x5b2   : > { %3482 = vmatmul.mubr.msk.bf16.vlgmr.msra.gmra.mxu0 %vm888_vm3, %v1600_v61 }
 0x5b3   : > { %3493 = vmatprep.mubr.msk.bf16.mxu0 %vm3682_vm1, %v3681_v6 }
 0x5b6   : > { %3476 = vmatmul.mubr.msk.bf16.vlgmr.msra.gmra.mxu1 %vm888_vm3, %v1550_v58 }
 0x5b7   : > { %3486 = vmatpush3.bf16.xpose.msra.mxu1 %v1657_v63  ;;  %3487 = vmatprep.mubr.msk.bf16.mxu1 %vm3682_vm1, %v3681_v6 }
 0x5b8   : > { %3497 = vmatprep.subr.bf16.mxu1 %v3681_v6 }
 0x5be   : > { %3488 = vmatmul.mubr.msk.bf16.vlgmr.msra.gmra.mxu1 %vm888_vm3, %v1650_v0 }
 0x5bf   : > { %3499 = vmatprep.mubr.msk.bf16.mxu1 %vm3682_vm1, %v3681_v6 }
 0x635   : > { %v4033_v1 = vpop.f32.mrf.mxu0 }
 0x637   : > { %v3459_v3 = vpop.f32.mrf.mxu0 }
 0x639   : > { %v1450_v4 = vpop.f32.mrf.mxu0 }
 0x63b   : > { %v3460_v5 = vpop.f32.mrf.mxu0 }
 0x66a   : > { %v4035_v7 = vpop.f32.mrf.mxu0 }
 0x66c   : > { %v3471_v8 = vpop.f32.mrf.mxu0 }
 0x66e   : > { %v4037_v9 = vpop.f32.mrf.mxu1  ;;  %v1546_v11 = vpop.f32.mrf.mxu0 }
 0x670   : > { %v3465_v12 = vpop.f32.mrf.mxu1  ;;  %v3472_v13 = vpop.f32.mrf.mxu0 }
 0x672   : > { %v1498_v14 = vpop.f32.mrf.mxu1  ;;  %v1643_v15 = vpop.f32.mrf.mxu0 }
 0x673   : > { %v1702_v17 = vsel %vm1033_vm4, %v1643_v15, -inf }
 0x674   : > { %v3466_v18 = vpop.f32.mrf.mxu1  ;;  %1703 = vmax.xlane.f32.xlu0 %v1702_v17  ;;  %v3483_v19 = vpop.f32.mrf.mxu0 }
 0x676   : > { %v1593_v20 = vpop.f32.mrf.mxu1  ;;  %v1646_v21 = vpop.f32.mrf.mxu0 }
 0x677   : > { %v1699_v22 = vsel %vm1033_vm4, %v1593_v20, -inf }
 0x678   : > { %1700 = vmax.xlane.f32.xlu1 %v1699_v22  ;;  %v3477_v23 = vpop.f32.mrf.mxu1  ;;  %v3484_v24 = vpop.f32.mrf.mxu0 }
 0x67a   : > { %v1596_v25 = vpop.f32.mrf.mxu1 }
 0x67c   : > { %v3478_v26 = vpop.f32.mrf.mxu1 }
 0x67e   : > { %v1693_v27 = vpop.f32.mrf.mxu1 }
 0x67f   : > { %v1705_v28 = vsel %vm1033_vm4, %v1693_v27, -inf }
 0x680   : > { %v3489_v30 = vpop.f32.mrf.mxu1  ;;  %1706 = vmax.xlane.f32.xlu0 %v1705_v28 }
 0x682   : > { %v1696_v33 = vpop.f32.mrf.mxu1 }
 0x684   : > { %v3490_v34 = vpop.f32.mrf.mxu1 }
 0x6fd   : > { %v1704_v35 = vpop.xlane.xlu0 %1703 }
 0x6fe   : > { %v1709_v36 = vsub.f32 %v1643_v15, %v1704_v35 }
 0x700   : > { %v1713_v37 = vmul.f32 1.442695, %v1709_v36 }
 0x701   : > { %v1701_v38 = vpop.xlane.xlu1 %1700 }
 0x702   : > { %3635 = vpow2.f32 %v1713_v37  ;;  %v1708_v39 = vsub.f32 %v1593_v20, %v1701_v38 }
 0x704   : > { %v1711_v40 = vmul.f32 1.442695, %v1708_v39 }
 0x706   : > { %3637 = vpow2.f32 %v1711_v40 }
 0x709   : > { %v1707_v48 = vpop.xlane.xlu0 %1706 }
 0x70a   : > { %v1710_v50 = vsub.f32 %v1693_v27, %v1707_v48 }
 0x70c   : > { %v1715_v51 = vmul.f32 1.442695, %v1710_v50 }
 0x70e   : > { %3639 = vpow2.f32 %v1715_v51 }
 0x70f   : > { %v3636_v41 = vpop.eup %3635 }
 0x710   : > { %v1720_v43 = vsel %vm1033_vm4, %v3636_v41, 0.0 }
 0x711   : > { %1721 = vadd.xlane.f32.xlu0 %v1720_v43 }
 0x713   : > { %v3638_v44 = vpop.eup %3637 }
 0x714   : > { %v1717_v47 = vsel %vm1033_vm4, %v3638_v44, 0.0 }
 0x715   : > { %1718 = vadd.xlane.f32.xlu1 %v1717_v47 }
 0x71b   : > { %v3640_v53 = vpop.eup %3639 }
 0x71c   : > { %v1723_v54 = vsel %vm1033_vm4, %v3640_v53, 0.0 }
 0x726   : > { %1783 = vrot.lane.b32.xlu1 %v3905_v32, %s3691_s5 }
 0x727   : > { %1735 = vrot.lane.b32.xlu0 %v3899_v29, %s3691_s5 }
 0x72a   : > { %1881 = vrot.lane.b32.xlu1 %v3899_v29, %s3692_s24 }
 0x72b   : > { %1831 = vrot.lane.b32.xlu0 %v3901_v31, %s3691_s5 }
 0x72e   : > { %1931 = vrot.lane.b32.xlu1 %v3905_v32, %s3692_s24 }
 0x72f   : > { %1879 = vrot.lane.b32.xlu0 %v3912_v42, %s3693_s19 }
 0x733   : > { %1929 = vrot.lane.b32.xlu0 %v3921_v45, %s3693_s19 }
 0x752   : > { %1724 = vadd.xlane.f32.xlu1 %v1723_v54 }
 0x763   : > { %1981 = vrot.lane.b32.xlu1 %v3901_v31, %s3692_s24  ;;  %s4316_s24 = scalar_lea.vmem %s4282_s6, %s3811_s17 }
 0x767   : > { %1979 = vrot.lane.b32.xlu1 %v3928_v46, %s3693_s19 }
 0x79a   : > { %v1722_v55 = vpop.xlane.xlu0 %1721 }
 0x79b   : > { %3641 = vrcp.f32 %v1722_v55 }
 0x79e   : > { %v1719_v56 = vpop.xlane.xlu1 %1718  ;;  %v1736_v57 = vpop.permute.xlu0 %1735 }
 0x79f   : > { %3643 = vrcp.f32 %v1719_v56  ;;  %v1741_v42 = vsel %vm1076_vm5, %v1736_v57, 0 }
 0x7a0   : > { %3492 = vmatpush3.bf16.msra.mxu0 %v1741_v42 }
 0x7a1   : > { %3503 = vmatprep.subr.bf16.mxu0 %v3681_v6 }
 0x7a2   : > { %v1784_v45 = vpop.permute.xlu1 %1783  ;;  %v1832_v3 = vpop.permute.xlu0 %1831 }
 0x7a3   : > { %v1789_v58 = vsel %vm1076_vm5, %v1784_v45, 0  ;;  %v1837_v5 = vsel %vm1076_vm5, %v1832_v3, 0 }
 0x7a4   : > { %3498 = vmatpush3.bf16.msra.mxu1 %v1789_v58 }
 0x7a5   : > { %3509 = vmatprep.subr.bf16.mxu1 %v3681_v6 }
 0x7a6   : > { %v1882_v61 = vpop.permute.xlu1 %1881  ;;  %v1880_v8 = vpop.permute.xlu0 %1879 }
 0x7a7   : > { %v1887_v63 = vsel %vm888_vm3, %v1882_v61, 0 }
 0x7a8   : > { %v3642_v59 = vpop.eup %3641 }
 0x7a9   : > { %v1730_v60 = vmul.f32 %v3642_v59, %v3636_v41 }
 0x7aa   : > { %v1932_v11 = vpop.permute.xlu1 %1931  ;;  %v1930_v21 = vpop.permute.xlu0 %1929 }
 0x7ab   : > { %v1733_v46 = vpack.c.bf16 %v1730_v60, %v1730_v60  ;;  %v1937_v20 = vsel %vm888_vm3, %v1932_v11, 0 }
 0x7ac   : > { %v3644_v62 = vpop.eup %3643 }
 0x7ad   : > { %3500 = vmatmul.mubr.msk.bf16.vlgmr.msra.gmra.mxu1 %vm1072_vm6, %v1733_v46  ;;  %v1729_v0 = vmul.f32 %v3644_v62, %v3638_v44 }
 0x7ae   : > { %3510 = vmatpush3.bf16.xpose.msra.mxu1 %v1887_v63  ;;  %3511 = vmatprep.mubr.msk.bf16.mxu1 %vm3682_vm1, %v3681_v6 }
 0x7af   : > { %v1732_v4 = vpack.c.bf16 %v1729_v0, %v1729_v0  ;;  %3521 = vmatprep.subr.bf16.mxu1 %v3681_v6 }
 0x7b1   : > { %3494 = vmatmul.mubr.msk.bf16.vlgmr.msra.gmra.mxu0 %vm1072_vm6, %v1732_v4 }
 0x7b2   : > { %3504 = vmatpush3.bf16.msra.mxu0 %v1837_v5  ;;  %3505 = vmatprep.mubr.msk.bf16.mxu0 %vm3682_vm1, %v3681_v6 }
 0x7b3   : > { %3515 = vmatprep.subr.bf16.mxu0 %v3681_v6 }
 0x7b5   : > { %3512 = vmatmul.mubr.msk.bf16.vlgmr.msra.gmra.mxu1 %vm888_vm3, %v1880_v8 }
 0x7b6   : > { %3523 = vmatprep.mubr.msk.bf16.mxu1 %vm3682_vm1, %v3681_v6 }
 0x7db   : > { %v1725_v12 = vpop.xlane.xlu1 %1724 }
 0x7dc   : > { %3645 = vrcp.f32 %v1725_v12 }
 0x7df   : > { %v1982_v13 = vpop.permute.xlu1 %1981 }
 0x7e0   : > { %v1987_v14 = vsel %vm888_vm3, %v1982_v13, 0 }
 0x7e1   : > { %3522 = vmatpush3.bf16.xpose.msra.mxu1 %v1987_v14 }
 0x7e2   : > { %3533 = vmatprep.subr.bf16.mxu1 %v3681_v6 }
 0x7e3   : > { %v1980_v15 = vpop.permute.xlu1 %1979 }
 0x7e8   : > { %3524 = vmatmul.mubr.msk.bf16.vlgmr.msra.gmra.mxu1 %vm888_vm3, %v1980_v15 }
 0x7e9   : > { %v3646_v17 = vpop.eup %3645  ;;  %3535 = vmatprep.mubr.msk.bf16.mxu1 %vm3682_vm1, %v3681_v6 }
 0x7ea   : > { %v1731_v18 = vmul.f32 %v3646_v17, %v3640_v53 }
 0x7ec   : > { %v1734_v19 = vpack.c.bf16 %v1731_v18, %v1731_v18 }
 0x7ee   : > { %3506 = vmatmul.mubr.msk.bf16.vlgmr.msra.gmra.mxu0 %vm1072_vm6, %v1734_v19 }
 0x7ef   : > { %3516 = vmatpush3.bf16.xpose.msra.mxu0 %v1937_v20  ;;  %3517 = vmatprep.mubr.msk.bf16.mxu0 %vm3682_vm1, %v3681_v6 }
 0x7f0   : > { %3527 = vmatprep.subr.bf16.mxu0 %v3681_v6 }
 0x7f6   : > { %3518 = vmatmul.mubr.msk.bf16.vlgmr.msra.gmra.mxu0 %vm888_vm3, %v1930_v21 }
 0x7f7   : > { %3529 = vmatprep.mubr.msk.bf16.mxu0 %vm3682_vm1, %v3681_v6 }
 0x86d   : > { %v1825_v22 = vpop.f32.mrf.mxu1 }
 0x86f   : > { %v3501_v23 = vpop.f32.mrf.mxu1 }
 0x871   : > { %v1777_v24 = vpop.f32.mrf.mxu0  ;;  %v1828_v25 = vpop.f32.mrf.mxu1 }
 0x873   : > { %v3495_v26 = vpop.f32.mrf.mxu0  ;;  %v3502_v27 = vpop.f32.mrf.mxu1 }
 0x875   : > { %v1780_v28 = vpop.f32.mrf.mxu0  ;;  %v1923_v30 = vpop.f32.mrf.mxu1 }
 0x876   : > { %v2029_v33 = vsel %vm1033_vm4, %v1923_v30, -inf }
 0x877   : > { %2030 = vmax.xlane.f32.xlu0 %v2029_v33  ;;  %v3496_v34 = vpop.f32.mrf.mxu0  ;;  %v3513_v35 = vpop.f32.mrf.mxu1 }
 0x878   : > { %v3604_v35 = vld [vmem:[%s3824_s27] sm:$0xff]  }
 0x879   : > { %v1926_v36 = vpop.f32.mrf.mxu1 }
 0x87b   : > { %v3514_v37 = vpop.f32.mrf.mxu1 }
 0x8a8   : > { %v2023_v38 = vpop.f32.mrf.mxu1 }
 0x8a9   : > { %v2035_v39 = vsel %vm1033_vm4, %v2023_v38, -inf }
 0x8aa   : > { %2036 = vmax.xlane.f32.xlu0 %v2035_v39  ;;  %v3525_v40 = vpop.f32.mrf.mxu1 }
 0x8ac   : > { %v2026_v41 = vpop.f32.mrf.mxu1 }
 0x8ae   : > { %v4086_v43 = vpop.f32.mrf.mxu0  ;;  %v3526_v44 = vpop.f32.mrf.mxu1 }
 0x8b0   : > { %v3507_v47 = vpop.f32.mrf.mxu0 }
 0x8b2   : > { %v1876_v48 = vpop.f32.mrf.mxu0 }
 0x8b4   : > { %v3508_v50 = vpop.f32.mrf.mxu0 }
 0x8b6   : > { %v1973_v51 = vpop.f32.mrf.mxu0 }
 0x8b7   : > { %v2032_v53 = vsel %vm1033_vm4, %v1973_v51, -inf }
 0x8b8   : > { %2033 = vmax.xlane.f32.xlu1 %v2032_v53  ;;  %v3519_v54 = vpop.f32.mrf.mxu0 }
 0x8ba   : > { %v1976_v55 = vpop.f32.mrf.mxu0 }
 0x8bc   : > { %v3520_v56 = vpop.f32.mrf.mxu0 }
 0x8c9   : > { %2065 = vrot.lane.b32.xlu1 %v3899_v29, %s3694_s1 }
 0x900   : > { %v2031_v57 = vpop.xlane.xlu0 %2030 }
 0x901   : > { %v2038_v42 = vsub.f32 %v1923_v30, %v2031_v57  ;;  %v3603_v30 = vld [vmem:[%s3824_s27 + $0x8] sm:$0xff]  }
 0x903   : > { %v2041_v45 = vmul.f32 1.442695, %v2038_v42 }
 0x905   : > { %3647 = vpow2.f32 %v2041_v45 }
 0x912   : > { %v3648_v58 = vpop.eup %3647 }
 0x913   : > { %v2047_v59 = vsel %vm1033_vm4, %v3648_v58, 0.0 }
 0x914   : > { %2048 = vadd.xlane.f32.xlu0 %v2047_v59 }
 0x933   : > { %v2037_v60 = vpop.xlane.xlu0 %2036 }
 0x934   : > { %v2040_v61 = vsub.f32 %v2023_v38, %v2037_v60 }
 0x936   : > { %v2045_v46 = vmul.f32 1.442695, %v2040_v61 }
 0x938   : > { %3649 = vpow2.f32 %v2045_v46 }
 0x941   : > { %v2034_v62 = vpop.xlane.xlu1 %2033 }
 0x942   : > { %v2039_v63 = vsub.f32 %v1973_v51, %v2034_v62 }
 0x944   : > { %v2043_v0 = vmul.f32 1.442695, %v2039_v63 }
 0x945   : > { %v3650_v3 = vpop.eup %3649  ;;  %v2066_v4 = vpop.permute.xlu1 %2065 }
 0x946   : > { %3651 = vpow2.f32 %v2043_v0  ;;  %v2071_v29 = vsel %vm1076_vm5, %v2066_v4, 0  ;;  %v2053_v5 = vsel %vm1033_vm4, %v3650_v3, 0.0  ;;  %v3299_v0 = vld [vmem:[%s4315_s28] ss:$0 sm:$0xff]  ;;  %s4318_s28 = sld [smem:[#allocation11_spill]] (!%p3317_p5) }
 0x947   : > { %2054 = vadd.xlane.f32.xlu0 %v2053_v5  ;;  %3528 = vmatpush3.bf16.msra.mxu0 %v2071_v29 }
 0x948   : > { %3539 = vmatprep.subr.bf16.mxu0 %v3681_v6 }
 0x953   : > { %v3652_v8 = vpop.eup %3651 }
 0x954   : > { %v2050_v11 = vsel %vm1033_vm4, %v3652_v8, 0.0 }
 0x955   : > { %2051 = vadd.xlane.f32.xlu1 %v2050_v11 }
 0x95d   : > { %2113 = vrot.lane.b32.xlu0 %v3905_v32, %s3694_s1 }
 0x961   : > { %2214 = vrot.lane.b32.xlu0 %v4037_v9, %s3695_s2 }
 0x965   : > { %2226 = vrot.lane.b32.xlu0 %v1825_v22, %s3696_s21 }
 0x966   : > { %2161 = vrot.lane.b32.xlu1 %v3901_v31, %s3694_s1 }
 0x96a   : > { %2212 = vrot.lane.b32.xlu1 %v4033_v1, %s3695_s2 }
 0x96e   : > { %2224 = vrot.lane.b32.xlu1 %v1777_v24, %s3696_s21 }
 0x972   : > { %2216 = vrot.lane.b32.xlu1 %v4035_v7, %s3695_s2 }
 0x99d   : > { %v2049_v12 = vpop.xlane.xlu0 %2048 }
 0x99e   : > { %3653 = vrcp.f32 %v2049_v12 }
 0x9ab   : > { %v3654_v13 = vpop.eup %3653 }
 0x9ac   : > { %v2059_v14 = vmul.f32 %v3654_v13, %v3648_v58 }
 0x9ae   : > { %v2062_v32 = vpack.c.bf16 %v2059_v14, %v2059_v14  ;;  %v3663_v14 = vld [vmem:[#allocation2] sm:$0x3] }
 0x9b0   : > { %3530 = vmatmul.mubr.msk.bf16.vlgmr.msra.gmra.mxu0 %vm1072_vm6, %v2062_v32 }
 0x9b1   : > { %3541 = vmatprep.mubr.msk.bf16.mxu0 %vm3682_vm1, %v3681_v6 }
 0x9d0   : > { %v2055_v9 = vpop.xlane.xlu0 %2054 }
 0x9d1   : > { %3655 = vrcp.f32 %v2055_v9  ;;  %v3664_v9 = vld [vmem:[#allocation2 + $0x2] sm:$0x3] }
 0x9d4   : > { %v2114_v15 = vpop.permute.xlu0 %2113 }
 0x9d5   : > { %v2119_v31 = vsel %vm1076_vm5, %v2114_v15, 0 }
 0x9d6   : > { %3534 = vmatpush3.bf16.msra.mxu1 %v2119_v31  ;;  %v3665_v31 = vld [vmem:[#allocation2 + $0x4] sm:$0x3] }
 0x9d7   : > { %3545 = vmatprep.subr.bf16.mxu1 %v3681_v6 }
 0x9de   : > { %v3656_v1 = vpop.eup %3655  ;;  %v2052_v7 = vpop.xlane.xlu1 %2051 }
 0x9df   : > { %3657 = vrcp.f32 %v2052_v7  ;;  %v2061_v17 = vmul.f32 %v3656_v1, %v3650_v3 }
 0x9e1   : > { %v2064_v20 = vpack.c.bf16 %v2061_v17, %v2061_v17 }
 0x9e2   : > { %v2162_v18 = vpop.permute.xlu1 %2161 }
 0x9e3   : > { %v2167_v19 = vsel %vm1076_vm5, %v2162_v18, 0 }
 0x9e4   : > { %3540 = vmatpush3.bf16.msra.mxu0 %v2167_v19 }
 0x9e5   : > { %3553 = vmatprep.subr.bf16.mxu0 %v3681_v6 }
 0x9e6   : > { %v2213_v41 = vpop.permute.xlu1 %2212 }
 0x9e7   : > { %3542 = vmatmul.mubr.msk.bf16.vlgmr.msra.gmra.mxu0 %vm1072_vm6, %v2064_v20  ;;  %v2245_v53 = vsel %vm888_vm3, %v3979_v49, %v2213_v41 }
 0x9e8   : > { %3557 = vmatprep.mubr.msk.bf16.mxu0 %vm3682_vm1, %v3681_v6 }
 0x9ea   : > { %v2225_v44 = vpop.permute.xlu1 %2224 }
 0x9eb   : > { %v2249_v55 = vsel %vm2248_vm7, %v2245_v53, %v2225_v44 }
 0x9ec   : > { %v3658_v21 = vpop.eup %3657 }
 0x9ed   : > { %v2060_v22 = vmul.f32 %v3658_v21, %v3652_v8  ;;  %v3698_v21 = vmov 269488144  }
 0x9ee   : > { %v2217_v50 = vpop.permute.xlu1 %2216 }
 0x9ef   : > { %v2063_v23 = vpack.c.bf16 %v2060_v22, %v2060_v22  ;;  %v2247_v59 = vsel %vm888_vm3, %v3985_v2, %v2217_v50  ;;  %v2396_v22 = vunpack.c.l.s4 %v3698_v21 }
 0x9f1   : > { %3536 = vmatmul.mubr.msk.bf16.vlgmr.msra.gmra.mxu1 %vm1072_vm6, %v2063_v23  ;;  %v3699_v23 = vmov 842150450  }
 0x9f2   : > { %3549 = vmatprep.mubr.msk.bf16.mxu1 %vm3682_vm1, %v3681_v6  ;;  %3546 = vmatpush3.bf16.msra.mxu1 %v3603_v30 }
 0x9f3   : > { %3547 = vmatprep.subr.bf16.mxu1 %v3681_v6 }
 0x9f6   : > { %3548 = vmatpush3.bf16.msra.mxu1 %v3604_v35 }
 0x9f7   : > { %3561 = vmatprep.subr.bf16.mxu1 %v3681_v6 }
 0xa70   : > { %v2107_v24 = vpop.f32.mrf.mxu0 }
 0xa71   : > { %2236 = vrot.lane.b32.xlu0 %v2107_v24, %s3697_s23  ;;  %v2403_v24 = vunpack.c.l.s4 %v3699_v23  ;;  %v3610_v23 = vld [vmem:[%s3843_s25] sm:$0xff]  }
 0xa72   : > { %v3531_v25 = vpop.f32.mrf.mxu0 }
 0xa73   : > { %v3700_v25 = vmov 1414812756  }
 0xa74   : > { %v2110_v26 = vpop.f32.mrf.mxu0 }
 0xa75   : > { %2228 = vrot.lane.b32.xlu0 %v4086_v43, %s3696_s21  ;;  %v2215_v43 = vpop.permute.xlu0 %2214  ;;  %v2410_v26 = vunpack.c.l.s4 %v3700_v25 }
 0xa76   : > { %v3532_v27 = vpop.f32.mrf.mxu0  ;;  %v2246_v51 = vsel %vm888_vm3, %v3981_v52, %v2215_v43 }
 0xa77   : > { %v2397_v27 = vunpack.c.0.s8 %v2396_v22  ;;  %v2411_v30 = vunpack.c.0.s8 %v2410_v26  ;;  %v3609_v22 = vld [vmem:[%s3843_s25 + $0x8] sm:$0xff]  }
 0xa79   : > { %v2227_v47 = vpop.permute.xlu0 %2226  ;;  %v4152_v35 = vsub.s32 %v2411_v30, %v3880_v10 }
 0xa7a   : > { %v2250_v54 = vsel %vm2248_vm7, %v2246_v51, %v2227_v47 }
 0xaa7   : > { %v2203_v28 = vpop.f32.mrf.mxu0 }
 0xaa9   : > { %v3543_v33 = vpop.f32.mrf.mxu0 }
 0xaaa   : > { %v4146_v33 = vsub.s32 %v2397_v27, %v3880_v10 }
 0xaab   : > { %v2206_v34 = vpop.f32.mrf.mxu0 }
 0xaad   : > { %v3544_v36 = vpop.f32.mrf.mxu0 }
 0xab1   : > { %v2155_v37 = vpop.f32.mrf.mxu1 }
 0xab2   : > { %2238 = vrot.lane.b32.xlu1 %v2155_v37, %s3697_s23 }
 0xab3   : > { %v3537_v38 = vpop.f32.mrf.mxu1 }
 0xab5   : > { %v2158_v39 = vpop.f32.mrf.mxu1 }
 0xab6   : > { %2240 = vrot.lane.b32.xlu1 %v2203_v28, %s3697_s23  ;;  %v2404_v28 = vunpack.c.0.s8 %v2403_v24  ;;  %v3305_v24 = vld [vmem:[%s4316_s24] ss:$0 sm:$0xff]  ;;  %s4317_s23 = sld [smem:[#allocation10_spill]] (!%p3317_p5) }
 0xab7   : > { %v3538_v40 = vpop.f32.mrf.mxu1  ;;  %s4319_s24 = sld [smem:[#allocation12_spill]] (!%p3317_p5) }
 0xab8   : > { %v4149_v34 = vsub.s32 %v2404_v28, %v3880_v10 }
 0xae3   : > { %v2237_v48 = vpop.permute.xlu0 %2236 }
 0xae4   : > { %v2253_v57 = vsel %vm2252_vm8, %v2249_v55, %v2237_v48 }
 0xae7   : > { %v2229_v42 = vpop.permute.xlu0 %2228 }
 0xae8   : > { %v2251_v60 = vsel %vm2248_vm7, %v2247_v59, %v2229_v42  ;;  %v3607_v42 = vld [vmem:[%s3843_s25 + $0x18] sm:$0xff]  }
 0xb24   : > { %v2239_v56 = vpop.permute.xlu1 %2238 }
 0xb25   : > { %v2254_v45 = vsel %vm2252_vm8, %v2250_v54, %v2239_v56  ;;  %v3605_v56 = vld [vmem:[%s3833_s14 + $0x8] sm:$0xff]  }
 0xb26   : > { %v2259_v58 = vcombine.low %v2253_v57, %v2254_v45  ;;  %3554 = vmatpush3.bf16.msra.mxu0 %v3605_v56  ;;  %v3606_v57 = vld [vmem:[%s3833_s14] sm:$0xff]   ;;  %v3608_v45 = vld [vmem:[%s3843_s25 + $0x10] sm:$0xff]   ;;  %s4320_s25 = sld [smem:[#allocation13_spill]] (!%p3317_p5) }
 0xb27   : > { %3555 = vmatprep.subr.bf16.mxu0 %v3681_v6 }
 0xb28   : > { %v2241_v61 = vpop.permute.xlu1 %2240  ;;  %v2266_v62 = vrot.slane %v2259_v58, %v3886_v16 }
 0xb29   : > { %v2255_v46 = vsel %vm2252_vm8, %v2251_v60, %v2241_v61  ;;  %v3303_v61 = vld [vmem:[%s725_s15] ss:$0 sm:$0xff] }
 0xb2a   : > { %v2273_v52 = vrot.slane %v2255_v46, %v3886_v16  ;;  %3556 = vmatpush3.bf16.msra.mxu0 %v3606_v57  ;;  %v3304_v46 = vld [vmem:[%s728_s3] ss:$0 sm:$0xff] }
 0xb2c   : > { %v2274_v63 = vcombine.low %v2266_v62, %v2273_v52  ;;  %v2484_v62 = vcombine.high %v3303_v61, %v3303_v61  ;;  %v2491_v52 = vrot.slane %v3303_v61, %v3886_v16 }
 0xb2e   : > { %v2276_v49 = vpack.c.bf16 %v2274_v63, %v2274_v63  ;;  %v2511_v63 = vcombine.high %v3304_v46, %v3304_v46 }
 0xb30   : > { %3550 = vmatmul.mubr.msk.bf16.vlgmr.msra.gmra.mxu1 %vm794_vm2, %v2276_v49  ;;  %v2518_v49 = vrot.slane %v3304_v46, %v3886_v16 }
 0xb31   : > { %3569 = vmatprep.mubr.msk.bf16.mxu1 %vm3682_vm1, %v3681_v6  ;;  %3562 = vmatpush3.bf16.msra.mxu1 %v3607_v42 }
 0xb32   : > { %3563 = vmatprep.subr.bf16.mxu1 %v3681_v6 }
 0xb35   : > { %3564 = vmatpush3.bf16.msra.mxu1 %v3608_v45 }
 0xb36   : > { %3565 = vmatprep.subr.bf16.mxu1 %v3681_v6 }
 0xb39   : > { %3566 = vmatpush3.bf16.msra.mxu1 %v3609_v22 }
 0xb3a   : > { %3567 = vmatprep.subr.bf16.mxu1 %v3681_v6  ;;  %v3309_v6 = vld [vmem:[%s722_s29] ss:$0 sm:$0xff] }
 0xb3d   : > { %3568 = vmatpush3.bf16.msra.mxu1 %v3610_v23 }
 0xbf0   : > { %v2337_v2 = vpop.f32.mrf.mxu1 }
 0xbf1   : > { %v2338_v3 = vadd.f32 %v3299_v0, %v2337_v2  ;;  %v2498_v2 = vrot.slane %v2484_v62, %v3886_v16 }
 0xbf2   : > { %v3551_v4 = vpop.f32.mrf.mxu1 }
 0xbf3   : > { %v2344_v29 = vcombine.high %v2338_v3, %v2338_v3  ;;  %v2351_v5 = vrot.slane %v2338_v3, %v3886_v16 }
 0xbf4   : > { %v2340_v8 = vpop.f32.mrf.mxu1 }
 0xbf5   : > { %v2358_v11 = vrot.slane %v2344_v29, %v3886_v16  ;;  %v2359_v12 = vcombine.high %v2351_v5, %v2351_v5  ;;  %v2363_v32 = vadd.f32 %v3663_v14, %v2351_v5  ;;  %v2499_v5 = vcombine.high %v2491_v52, %v2491_v52 }
 0xbf6   : > { %v3552_v13 = vpop.f32.mrf.mxu1  ;;  %v2525_v8 = vrot.slane %v2511_v63, %v3886_v16  ;;  %v2526_v14 = vcombine.high %v2518_v49, %v2518_v49 }
 0xbf7   : > { %v2364_v15 = vadd.f32 %v3664_v9, %v2359_v12  ;;  %v2365_v1 = vadd.f32 %v3665_v31, %v2358_v11 }
 0xbf9   : > { %v2371_v7 = vcombine.low %v2363_v32, %v2364_v15  ;;  %v2385_v18 = vrot.slane %v2365_v1, %v3886_v16 }
 0xbfb   : > { %v2378_v17 = vrot.slane %v2371_v7, %v3886_v16 }
 0xbfd   : > { %v2386_v19 = vcombine.low %v2378_v17, %v2385_v18 }
 0xbff   : > { %v2389_v20 = vsel %vm2388_vm9, %v2386_v19, 0.0 }
 0xc00   : > { %2390 = vadd.xlane.f32.xlu0 %v2389_v20 }
 0xc89   : > { %v2391_v36 = vpop.xlane.xlu0 %2390 }
 0xc8a   : > { %v2393_v37 = vmul.f32 0.03125, %v2391_v36 }
 0xc8c   : > { %v2401_v38 = vrot.slane %v2393_v37, %v4146_v33  ;;  %v2408_v39 = vrot.slane %v2393_v37, %v4149_v34  ;;  %v2415_v40 = vrot.slane %v2393_v37, %v4152_v35 }
 0xc8e   : > { %v2419_v41 = vsub.f32 %v2363_v32, %v2401_v38  ;;  %v2420_v43 = vsub.f32 %v2364_v15, %v2408_v39  ;;  %v2421_v44 = vsub.f32 %v2365_v1, %v2415_v40 }
 0xc90   : > { %v2422_v47 = vmul.f32 %v2419_v41, %v2419_v41  ;;  %v2423_v48 = vmul.f32 %v2420_v43, %v2420_v43  ;;  %v2424_v50 = vmul.f32 %v2421_v44, %v2421_v44 }
 0xc92   : > { %v2428_v10 = vcombine.low %v2422_v47, %v2423_v48  ;;  %v2442_v53 = vrot.slane %v2424_v50, %v3886_v16 }
 0xc94   : > { %v2435_v51 = vrot.slane %v2428_v10, %v3886_v16 }
 0xc96   : > { %v2443_v54 = vcombine.low %v2435_v51, %v2442_v53 }
 0xc98   : > { %v2445_v55 = vsel %vm2388_vm9, %v2443_v54, 0.0 }
 0xc99   : > { %2446 = vadd.xlane.f32.xlu1 %v2445_v55 }
 0xd22   : > { %v2447_v58 = vpop.xlane.xlu1 %2446 }
 0xd23   : > { %v2448_v59 = vmul.f32 0.03125, %v2447_v58 }
 0xd25   : > { %v2449_v60 = vadd.f32 1e-05, %v2448_v59 }
 0xd27   : > { %3659 = vrsqrt.f32 %v2449_v60 }
 0xd34   : > { %v3660_v0 = vpop.eup %3659 }
 0xd35   : > { %v2458_v3 = vrot.slane %v3660_v0, %v4146_v33  ;;  %v2465_v4 = vrot.slane %v3660_v0, %v4149_v34  ;;  %v2472_v29 = vrot.slane %v3660_v0, %v4152_v35 }
 0xd37   : > { %v2476_v11 = vmul.f32 %v2458_v3, %v2419_v41  ;;  %v2477_v12 = vmul.f32 %v2465_v4, %v2420_v43  ;;  %v2478_v13 = vmul.f32 %v2472_v29, %v2421_v44 }
 0xd39   : > { %v2503_v32 = vmul.f32 %v2491_v52, %v2476_v11  ;;  %v2504_v9 = vmul.f32 %v2499_v5, %v2477_v12  ;;  %v2505_v15 = vmul.f32 %v2498_v2, %v2478_v13  ;;  %v3315_v13 = vld [vmem:[%s731_s20] ss:$0 sm:$0xff] }
 0xd3b   : > { %v2530_v31 = vadd.f32 %v2518_v49, %v2503_v32  ;;  %v2531_v1 = vadd.f32 %v2526_v14, %v2504_v9  ;;  %v2532_v7 = vadd.f32 %v2525_v8, %v2505_v15  ;;  %v3316_v14 = vld [vmem:[%s734_s22] ss:$0 sm:$0xff]  ;;  %v2844_v32 = vcombine.high %v3315_v13, %v3315_v13 }
 0xd3c   : > { %v2851_v9 = vrot.slane %v3315_v13, %v3886_v16  ;;  %v2871_v15 = vcombine.high %v3316_v14, %v3316_v14 }
 0xd3d   : > { %v2536_v17 = vcombine.low %v2530_v31, %v2531_v1  ;;  %v2550_v19 = vrot.slane %v2532_v7, %v3886_v16 }
 0xd3f   : > { %v2543_v18 = vrot.slane %v2536_v17, %v3886_v16  ;;  %v2859_v17 = vcombine.high %v2851_v9, %v2851_v9 }
 0xd41   : > { %v2551_v20 = vcombine.low %v2543_v18, %v2550_v19 }
 0xd43   : > { %v2553_v21 = vpack.c.bf16 %v2551_v20, %v2551_v20 }
 0xd45   : > { %3558 = vmatmul.mubr.msk.bf16.vlgmr.msra.gmra.mxu0 %vm794_vm2, %v2553_v21  ;;  %v2885_v21 = vrot.slane %v2871_v15, %v3886_v16 }
 0xe05   : > { %v2614_v25 = vpop.f32.mrf.mxu0 }
 0xe06   : > { %v2615_v26 = vadd.f32 %v3305_v24, %v2614_v25 }
 0xe07   : > { %v3559_v27 = vpop.f32.mrf.mxu0 }
 0xe08   : > { %v2620_v28 = vmax.f32 %v2615_v26, 0.0 }
 0xe09   : > { %v2617_v30 = vpop.f32.mrf.mxu0 }
 0xe0a   : > { %v2621_v36 = vpack.c.bf16 %v2620_v28, %v2620_v28 }
 0xe0b   : > { %v3560_v37 = vpop.f32.mrf.mxu0 }
 0xe0c   : > { %3570 = vmatmul.mubr.msk.bf16.vlgmr.msra.gmra.mxu1 %vm2661_vm10, %v2621_v36 }
 0xecc   : > { %v2699_v38 = vpop.f32.mrf.mxu1 }
 0xecd   : > { %v2700_v39 = vadd.f32 %v3309_v6, %v2699_v38 }
 0xece   : > { %v3571_v40 = vpop.f32.mrf.mxu1 }
 0xecf   : > { %v2706_v41 = vcombine.high %v2700_v39, %v2700_v39  ;;  %v2713_v43 = vrot.slane %v2700_v39, %v3886_v16 }
 0xed0   : > { %v2702_v44 = vpop.f32.mrf.mxu1 }
 0xed1   : > { %v2720_v47 = vrot.slane %v2706_v41, %v3886_v16  ;;  %v2721_v48 = vcombine.high %v2713_v43, %v2713_v43  ;;  %v2725_v10 = vadd.f32 %v2713_v43, %v2530_v31  ;;  %v2878_v31 = vrot.slane %v3316_v14, %v3886_v16 }
 0xed2   : > { %v3572_v50 = vpop.f32.mrf.mxu1 }
 0xed3   : > { %v2726_v51 = vadd.f32 %v2721_v48, %v2531_v1  ;;  %v2727_v53 = vadd.f32 %v2720_v47, %v2532_v7  ;;  %v2858_v7 = vrot.slane %v2844_v32, %v3886_v16  ;;  %v2886_v22 = vcombine.high %v2878_v31, %v2878_v31 }
 0xed5   : > { %v2733_v54 = vcombine.low %v2725_v10, %v2726_v51  ;;  %v2747_v56 = vrot.slane %v2727_v53, %v3886_v16 }
 0xed7   : > { %v2740_v55 = vrot.slane %v2733_v54, %v3886_v16 }
 0xed9   : > { %v2748_v57 = vcombine.low %v2740_v55, %v2747_v56 }
 0xedb   : > { %v2750_v42 = vsel %vm2388_vm9, %v2748_v57, 0.0 }
 0xedc   : > { %2751 = vadd.xlane.f32.xlu0 %v2750_v42 }
 0xf65   : > { %v2752_v45 = vpop.xlane.xlu0 %2751 }
 0xf66   : > { %v2753_v58 = vmul.f32 0.03125, %v2752_v45 }
 0xf68   : > { %v2761_v59 = vrot.slane %v2753_v58, %v4146_v33  ;;  %v2768_v60 = vrot.slane %v2753_v58, %v4149_v34  ;;  %v2775_v61 = vrot.slane %v2753_v58, %v4152_v35 }
 0xf6a   : > { %v2779_v46 = vsub.f32 %v2725_v10, %v2761_v59  ;;  %v2780_v62 = vsub.f32 %v2726_v51, %v2768_v60  ;;  %v2781_v52 = vsub.f32 %v2727_v53, %v2775_v61 }
 0xf6c   : > { %v2782_v63 = vmul.f32 %v2779_v46, %v2779_v46  ;;  %v2783_v49 = vmul.f32 %v2780_v62, %v2780_v62  ;;  %v2784_v0 = vmul.f32 %v2781_v52, %v2781_v52 }
 0xf6e   : > { %v2788_v2 = vcombine.low %v2782_v63, %v2783_v49  ;;  %v2802_v4 = vrot.slane %v2784_v0, %v3886_v16 }
 0xf70   : > { %v2795_v3 = vrot.slane %v2788_v2, %v3886_v16 }
 0xf72   : > { %v2803_v29 = vcombine.low %v2795_v3, %v2802_v4 }
 0xf74   : > { %v2805_v5 = vsel %vm2388_vm9, %v2803_v29, 0.0 }
 0xf75   : > { %2806 = vadd.xlane.f32.xlu0 %v2805_v5 }
 0xffe   : > { %v2807_v8 = vpop.xlane.xlu0 %2806 }
 0xfff   : > { %v2808_v11 = vmul.f32 0.03125, %v2807_v8 }
0x1001   : > { %v2809_v12 = vadd.f32 1e-05, %v2808_v11 }
0x1003   : > { %3661 = vrsqrt.f32 %v2809_v12 }
0x1010   : > { %v3662_v1 = vpop.eup %3661 }
0x1011   : > { %v2818_v18 = vrot.slane %v3662_v1, %v4146_v33  ;;  %v2825_v19 = vrot.slane %v3662_v1, %v4149_v34  ;;  %v2832_v20 = vrot.slane %v3662_v1, %v4152_v35 }
0x1013   : > { %v2836_v23 = vmul.f32 %v2818_v18, %v2779_v46  ;;  %v2837_v24 = vmul.f32 %v2825_v19, %v2780_v62  ;;  %v2838_v25 = vmul.f32 %v2832_v20, %v2781_v52 }
0x1015   : > { %v2863_v26 = vmul.f32 %v2851_v9, %v2836_v23  ;;  %v2864_v27 = vmul.f32 %v2859_v17, %v2837_v24  ;;  %v2865_v28 = vmul.f32 %v2858_v7, %v2838_v25 }
0x1016   : > { %2900 = sbr.rel (%p3317_p5) target bundleno = 4632 (0x1218), region = 100 }
0x1017   : > { %v2890_v30 = vadd.f32 %v2878_v31, %v2863_v26  ;;  %v2891_v36 = vadd.f32 %v2886_v22, %v2864_v27  ;;  %v2892_v37 = vadd.f32 %v2885_v21, %v2865_v28 }
0x1019   : > { %2894 = vst.msk [vmem:[#allocation2] sm:$0x3] %vm2893_vm11, %v2890_v30  ;;  %2895 = vst.msk [vmem:[#allocation2 + $0x2] sm:$0x3] %vm2893_vm11, %v2891_v36 }
0x101a   : > { %2896 = vst.msk [vmem:[#allocation2 + $0x4] sm:$0x3] %vm2893_vm11, %v2892_v37 }
0x101b   : > { %v2906_v6 = vcombine.low %v2890_v30, %v2891_v36  ;;  %v2920_v38 = vrot.slane %v2892_v37, %v3886_v16  ;;  %v3318_v62 = vld [vmem:[%s4289_s13] ss:$0 sm:$0xff]  ;;  %vm3120_vm12 = vcmask 1024  }
0x101c   : > { %v3319_v52 = vld [vmem:[%s4317_s23] ss:$0 sm:$0xff]  ;;  %v3017_v63 = vcombine.high %v3318_v62, %v3318_v62  ;;  %v3024_v49 = vrot.slane %v3318_v62, %v3886_v16 }
0x101d   : > { %v2913_v39 = vrot.slane %v2906_v6, %v3886_v16  ;;  %v3044_v0 = vcombine.high %v3319_v52, %v3319_v52  ;;  %v3051_v2 = vrot.slane %v3319_v52, %v3886_v16  ;;  %v3320_v7 = vld [vmem:[%s4318_s28] ss:$0 sm:$0xff] }
0x101e   : > { %v3031_v4 = vrot.slane %v3017_v63, %v3886_v16  ;;  %v3032_v11 = vcombine.high %v3024_v49, %v3024_v49  ;;  %v3323_v25 = vld [vmem:[%s4319_s24] ss:$0 sm:$0xff] }
0x101f   : > { %v2921_v40 = vcombine.low %v2913_v39, %v2920_v38  ;;  %v3058_v12 = vrot.slane %v3044_v0, %v3886_v16  ;;  %v3059_v9 = vcombine.high %v3051_v2, %v3051_v2 }
0x1021   : > { %v2923_v41 = vsel %vm2388_vm9, %v2921_v40, 0.0 }
0x1022   : > { %2924 = vadd.xlane.f32.xlu0 %v2923_v41 }
0x10ab   : > { %v2925_v43 = vpop.xlane.xlu0 %2924 }
0x10ac   : > { %v2926_v44 = vmul.f32 0.03125, %v2925_v43 }
0x10ae   : > { %v2934_v47 = vrot.slane %v2926_v44, %v4146_v33  ;;  %v2941_v48 = vrot.slane %v2926_v44, %v4149_v34  ;;  %v2948_v50 = vrot.slane %v2926_v44, %v4152_v35 }
0x10b0   : > { %v2952_v10 = vsub.f32 %v2890_v30, %v2934_v47  ;;  %v2953_v51 = vsub.f32 %v2891_v36, %v2941_v48  ;;  %v2954_v53 = vsub.f32 %v2892_v37, %v2948_v50  ;;  %v3324_v30 = vld [vmem:[#allocation3] ss:$0 sm:$0xff] }
0x10b2   : > { %v2955_v54 = vmul.f32 %v2952_v10, %v2952_v10  ;;  %v2956_v55 = vmul.f32 %v2953_v51, %v2953_v51  ;;  %v2957_v56 = vmul.f32 %v2954_v53, %v2954_v53 }
0x10b4   : > { %v2961_v57 = vcombine.low %v2955_v54, %v2956_v55  ;;  %v2975_v45 = vrot.slane %v2957_v56, %v3886_v16 }
0x10b6   : > { %v2968_v42 = vrot.slane %v2961_v57, %v3886_v16 }
0x10b8   : > { %v2976_v58 = vcombine.low %v2968_v42, %v2975_v45 }
0x10ba   : > { %v2978_v59 = vsel %vm2388_vm9, %v2976_v58, 0.0 }
0x10bb   : > { %2979 = vadd.xlane.f32.xlu0 %v2978_v59 }
0x1144   : > { %v2980_v60 = vpop.xlane.xlu0 %2979 }
0x1145   : > { %v2981_v61 = vmul.f32 0.03125, %v2980_v60 }
0x1147   : > { %v2982_v46 = vadd.f32 1e-05, %v2981_v61 }
0x1149   : > { %3666 = vrsqrt.f32 %v2982_v46 }
0x1156   : > { %v3667_v3 = vpop.eup %3666 }
0x1157   : > { %v2991_v29 = vrot.slane %v3667_v3, %v4146_v33  ;;  %v2998_v5 = vrot.slane %v3667_v3, %v4149_v34  ;;  %v3005_v8 = vrot.slane %v3667_v3, %v4152_v35  ;;  %v3321_v33 = vld [vmem:[%s4318_s28 + $0x1] ss:$0 sm:$0xff]  ;;  %v3322_v34 = vld [vmem:[%s4318_s28 + $0x2] ss:$0 sm:$0xff] }
0x1159   : > { %v3009_v13 = vmul.f32 %v2991_v29, %v2952_v10  ;;  %v3010_v14 = vmul.f32 %v2998_v5, %v2953_v51  ;;  %v3011_v32 = vmul.f32 %v3005_v8, %v2954_v53 }
0x115b   : > { %v3036_v15 = vmul.f32 %v3024_v49, %v3009_v13  ;;  %v3037_v31 = vmul.f32 %v3032_v11, %v3010_v14  ;;  %v3038_v1 = vmul.f32 %v3031_v4, %v3011_v32 }
0x115d   : > { %v3063_v16 = vadd.f32 %v3051_v2, %v3036_v15  ;;  %v3064_v35 = vadd.f32 %v3059_v9, %v3037_v31  ;;  %v3065_v17 = vadd.f32 %v3058_v12, %v3038_v1 }
0x115f   : > { %v3087_v18 = vmul.f32 %v3320_v7, %v3063_v16  ;;  %v3088_v19 = vmul.f32 %v3321_v33, %v3064_v35  ;;  %v3089_v20 = vmul.f32 %v3322_v34, %v3065_v17 }
0x1161   : > { %v3090_v21 = vsel %vm2893_vm11, %v3087_v18, 0.0  ;;  %v3091_v22 = vsel %vm2893_vm11, %v3088_v19, 0.0  ;;  %v3093_v24 = vsel %vm2893_vm11, %v3089_v20, 0.0 }
0x1162   : > { %v3092_v23 = vadd.f32 %v3091_v22, %v3090_v21 }
0x1164   : > { %v3094_v26 = vadd.f32 %v3093_v24, %v3092_v23 }
0x1166   : > { %v3102_v27 = vmul.f32 %v3323_v25, %v3094_v26 }
0x1168   : > { %v3103_v28 = vsel %vm2893_vm11, %v3102_v27, 0.0 }
0x1169   : > { %3104 = vadd.xlane.f32.xlu1 %v3103_v28 }
0x11f2   : > { %v3105_v36 = vpop.xlane.xlu1 %3104 }
0x11f3   : > { %v3113_v37 = vadd.f32 %v3324_v30, %v3105_v36 }
0x11f5   : > { %v3114_v6 = vsub.f32 0.0, %v3113_v37 }
0x11f7   : > { %v3115_v38 = vmul.f32 1.442695, %v3114_v6 }
0x11f9   : > { %3668 = vpow2.f32 %v3115_v38 }
0x1206   : > { %v3669_v39 = vpop.eup %3668 }
0x1207   : > { %v3117_v40 = vadd.f32 1.0, %v3669_v39 }
0x1209   : > { %3670 = vrcp.f32 %v3117_v40 }
0x1216   : > { %v3671_v41 = vpop.eup %3670 }
0x1217   : > { %3121 = vst.msk [vmem:[%s4320_s25] sm:$0x3] %vm3120_vm12, %v3671_v41 }
0x1218 PF: > { %s4321_s29 = sld [smem:[#allocation4_spill]] }
0x121e   : > { %s30_s29 = sadd.s32 1, %s4321_s29  }
0x121f   : > { %p27_p6 = scmp.ge.s32.totalorder %s30_s29, 4  }
0x1221   :  { %29 = sbr.rel (!%p27_p6) target bundleno = 10 (0xa), region = 159 }

</bundles_post_ra>
